<compile_context>
chip_gen: v7x
topology: tpu7x:2x2x1
jax: 0.10.0
libtpu: 0.0.40
codegen_flags: <defaults>
</compile_context>

<pallas_src>
import jax
import jax.numpy as jnp
from jax.experimental import pallas as pl
from jax.experimental.pallas import tpu as pltpu

THRESHOLD = 0.01

# Lane assignment inside the per-batch (1, 128) accumulator / output row.
_CORR, _KL, _ENT, _UV, _SEG, _L1 = 0, 1, 2, 3, 4, 5


def _sum_all(x):
    """Full reduction of a 2-D tile to a (1, 1) array (lane then sublane)."""
    return jnp.sum(jnp.sum(x, axis=1, keepdims=True), axis=0, keepdims=True)


def _loss_kernel(assign_ref, ver3d_ref, model_ref, nocs_ref, mat_gt_ref,
                 uv_pred_ref, uv_gt_ref, segp_ref, segg_ref,
                 out_ref, acc_ref):
    p = pl.program_id(1)
    n_p = pl.num_programs(1)
    lane = jax.lax.broadcasted_iota(jnp.int32, (1, 128), 1)

    @pl.when(p == 0)
    def _init():
        acc_ref[...] = jnp.zeros_like(acc_ref)
        # Vertex L1 is independent of the point axis -> compute once per batch.
        l1 = jnp.abs(ver3d_ref[0] - 9.0 * model_ref[0])          # (nv, 3)
        acc_ref[...] += jnp.where(lane == _L1, _sum_all(l1), 0.0)

    # ----- softmax / log_softmax over nv (lane dim) -----
    a = assign_ref[0]                                            # (tp, nv)
    a_max = jnp.max(a, axis=-1, keepdims=True)
    shifted = a - a_max
    e = jnp.exp(shifted)
    denom = jnp.sum(e, axis=-1, keepdims=True)
    inv_denom = pl.reciprocal(denom, approx=False)
    soft = e * inv_denom
    log_assign = shifted - jnp.log(denom)

    # ----- coords = soft @ (ver3d/9 * 4.5) = soft @ (0.5 * ver3d) -----
    inst = ver3d_ref[0] * 0.5                                    # (nv, 3)
    coords = jnp.dot(soft, inst, preferred_element_type=jnp.float32)  # (tp, 3)

    # ----- smooth-L1-style correspondence term, summed over the tile -----
    diff = jnp.abs(coords - nocs_ref[0])
    less = diff * diff * (1.0 / (2.0 * THRESHOLD))
    higher = diff - THRESHOLD / 2.0
    corr_s = _sum_all(jnp.where(diff > THRESHOLD, higher, less))

    # ----- KL(mat_gt || soft_assign), xlogy semantics, summed -----
    t = mat_gt_ref[0]                                            # (tp, nv)
    xlogx = jnp.where(t > 0.0, t * jnp.log(jnp.maximum(t, 1e-30)), 0.0)
    kl_s = _sum_all(xlogx - t * log_assign)

    # ----- entropy of the soft assignment, summed -----
    ent_s = _sum_all(-(soft * log_assign))

    # ----- UV L1, summed -----
    uv_s = _sum_all(jnp.abs(uv_pred_ref[0] - uv_gt_ref[0]))

    # ----- per-point cross entropy over the class (sublane) axis -----
    logits = segp_ref[0]                                         # (C, tp)
    lmax = jnp.max(logits, axis=0, keepdims=True)
    lsm = (logits - lmax) - jnp.log(
        jnp.sum(jnp.exp(logits - lmax), axis=0, keepdims=True))
    gt = segg_ref[0]                                             # (1, tp) int32
    cls_idx = jax.lax.broadcasted_iota(jnp.int32, logits.shape, 0)
    onehot = (cls_idx == gt).astype(jnp.float32)
    seg_s = _sum_all(-(onehot * lsm))

    acc_ref[...] += (jnp.where(lane == _CORR, corr_s, 0.0)
                     + jnp.where(lane == _KL, kl_s, 0.0)
                     + jnp.where(lane == _ENT, ent_s, 0.0)
                     + jnp.where(lane == _UV, uv_s, 0.0)
                     + jnp.where(lane == _SEG, seg_s, 0.0))

    @pl.when(p == n_p - 1)
    def _store():
        out_ref[...] = acc_ref[...][None]


def _pick_point_tile(n_pts, nv):
    """Largest lane-aligned point tile that keeps the two big double-buffered
    (tp, nv) f32 inputs (assign_mat + mat_gt) under ~16 MiB of VMEM."""
    budget = 16 * 1024 * 1024
    cap = budget // (2 * 2 * nv * 4)          # 2 arrays x 2 pipeline buffers
    cap = max(128, min(1024, cap))
    if n_pts <= cap:
        return n_pts                          # single tile per batch
    t = (min(cap, n_pts) // 128) * 128
    while t >= 128:
        if n_pts % t == 0:
            return t
        t -= 128
    # TODO(synk): no 128-aligned divisor of n_pts fits the budget; fall back to
    # a single (possibly large) tile to keep BlockSpec lane constraints valid.
    return n_pts


def loss9_forward(assign_mat, seg_pred, ver3d_pred, uv_pred, nocs, model,
                  seg_gt, mat_gt, uv_gt,
                  corr_wt=1.0, l1_wt=1.0, uv_wt=1.0, mat_wt=0.1, seg_wt=0.1):
    bs, n_pts, nv = assign_mat.shape
    _, nvert, _ = ver3d_pred.shape
    n_cls = seg_pred.shape[1]

    tp = _pick_point_tile(n_pts, nv)
    assert n_pts % tp == 0
    grid = (bs, n_pts // tp)
    f32 = jnp.float32

    # seg_pred stays in its native (bs, C, n_pts) layout (no extra XLA transpose
    # pass over HBM); seg_gt just gets a unit axis so points land on the lanes.
    seg_gt_3d = seg_gt.astype(jnp.int32)[:, None, :]             # (bs, 1, n_pts)

    pt_spec = lambda last: pl.BlockSpec((1, tp, last), lambda b, p: (b, p, 0))
    vert_spec = pl.BlockSpec((1, nvert, 3), lambda b, p: (b, 0, 0))

    sums = pl.pallas_call(
        _loss_kernel,
        out_shape=jax.ShapeDtypeStruct((bs, 1, 128), f32),
        grid_spec=pltpu.PrefetchScalarGridSpec(
            num_scalar_prefetch=0,
            grid=grid,
            in_specs=[
                pt_spec(nv),                                     # assign_mat
                vert_spec,                                       # ver3d_pred
                vert_spec,                                       # model
                pt_spec(3),                                      # nocs
                pt_spec(nv),                                     # mat_gt
                pt_spec(2),                                      # uv_pred
                pt_spec(2),                                      # uv_gt
                pl.BlockSpec((1, n_cls, tp), lambda b, p: (b, 0, p)),  # seg_pred
                pl.BlockSpec((1, 1, tp), lambda b, p: (b, 0, p)),      # seg_gt
            ],
            out_specs=pl.BlockSpec((1, 1, 128), lambda b, p: (b, 0, 0)),
            scratch_shapes=[pltpu.VMEM((1, 128), f32)],
        ),
        compiler_params=pltpu.CompilerParams(
            dimension_semantics=("parallel", "arbitrary"),
            vmem_limit_bytes=40 * 1024 * 1024),
    )(assign_mat, ver3d_pred, model, nocs, mat_gt, uv_pred, uv_gt,
      seg_pred, seg_gt_3d)

    corr_sum = jnp.sum(sums[:, 0, _CORR])
    kl_sum = jnp.sum(sums[:, 0, _KL])
    ent_sum = jnp.sum(sums[:, 0, _ENT])
    uv_sum = jnp.sum(sums[:, 0, _UV])
    seg_sum = jnp.sum(sums[:, 0, _SEG])
    l1_sum = jnp.sum(sums[:, 0, _L1])

    # ----- scalar glue (weighting / means), matching the PyTorch code -----
    corr_loss = corr_wt * corr_sum / (bs * n_pts)

    # NOTE: the PyTorch code takes `n_pts` from inst_shape.shape[1], i.e. the
    # number of vertices nv, and uses it as the KL normalizer.  Keep that
    # behaviour for parity — do NOT "fix" it to the real n_pts.
    n_pts_torch = nvert

    # data-dependent reweighting (corr_loss.item() thresholds)
    lt001 = corr_loss < 0.01
    lt01 = corr_loss < 0.1
    mat_wt_d = jnp.where(lt001, 0.001, jnp.where(lt01, 0.01, mat_wt))
    uv_wt_d = jnp.where(lt001, 0.5, uv_wt)
    l1_wt_d = jnp.where(lt001, 0.5, jnp.where(lt01, 1.0, l1_wt))
    seg_wt_d = jnp.where(lt001, seg_wt, jnp.where(lt01, 0.01, seg_wt))

    kl_loss = mat_wt_d * kl_sum / (bs * n_pts_torch)
    entropy_loss = 0.001 * ent_sum / (bs * n_pts)
    uv_loss = uv_wt_d * uv_sum / (bs * n_pts * 2)
    l1_loss = l1_wt_d * l1_sum / (bs * nvert * 3)
    seg_loss = seg_wt_d * seg_sum / (bs * n_pts)

    total_loss = corr_loss + l1_loss + kl_loss + seg_loss + entropy_loss
    return total_loss, corr_loss, l1_loss, uv_loss, kl_loss, seg_loss


# ----------------------- pure-JAX reference for sanity -----------------------
def _reference(assign_mat, seg_pred, ver3d_pred, uv_pred, nocs, model,
               seg_gt, mat_gt, uv_gt,
               corr_wt=1.0, l1_wt=1.0, uv_wt=1.0, mat_wt=0.1, seg_wt=0.1):
    inst_shape = ver3d_pred / 9.0
    bs, n_pts_torch, _ = inst_shape.shape
    soft = jax.nn.softmax(assign_mat, axis=2)
    coords = jnp.einsum('bpn,bnc->bpc', soft, inst_shape * 4.5)
    diff = jnp.abs(coords - nocs)
    less = diff ** 2 / (2.0 * THRESHOLD)
    higher = diff - THRESHOLD / 2.0
    corr = jnp.where(diff > THRESHOLD, higher, less)
    corr_loss = corr_wt * jnp.mean(jnp.sum(corr, axis=2))
    log_assign = jax.nn.log_softmax(assign_mat, axis=2)
    lt001, lt01 = corr_loss < 0.01, corr_loss < 0.1
    mat_wt = jnp.where(lt001, 0.001, jnp.where(lt01, 0.01, mat_wt))
    uv_wt = jnp.where(lt001, 0.5, uv_wt)
    l1_wt = jnp.where(lt001, 0.5, jnp.where(lt01, 1.0, l1_wt))
    seg_wt = jnp.where(lt001, seg_wt, jnp.where(lt01, 0.01, seg_wt))
    kl = jnp.where(mat_gt > 0,
                   mat_gt * jnp.log(jnp.maximum(mat_gt, 1e-30)) - mat_gt * log_assign,
                   0.0)
    kl_loss = mat_wt * jnp.sum(kl) / (bs * n_pts_torch)
    entropy_loss = 0.001 * jnp.mean(-jnp.sum(soft * log_assign, 2))
    uv_loss = uv_wt * jnp.mean(jnp.abs(uv_pred - uv_gt))
    l1_loss = l1_wt * jnp.mean(jnp.abs(ver3d_pred - model * 9.0))
    lsm = jax.nn.log_softmax(seg_pred, axis=1)
    seg_pt = -jnp.take_along_axis(lsm, seg_gt[:, None, :], axis=1)[:, 0, :]
    seg_loss = seg_wt * jnp.mean(seg_pt)
    total = corr_loss + l1_loss + kl_loss + seg_loss + entropy_loss
    return total, corr_loss, l1_loss, uv_loss, kl_loss, seg_loss


if __name__ == "__main__":
    key = jax.random.PRNGKey(0)
    bs, n_pts, nv, n_cls = 2, 64, 128, 4

    ks = jax.random.split(key, 9)
    assign_mat = jax.random.normal(ks[0], (bs, n_pts, nv), jnp.float32)
    seg_pred = jax.random.normal(ks[1], (bs, n_cls, n_pts), jnp.float32)
    ver3d_pred = jax.random.normal(ks[2], (bs, nv, 3), jnp.float32) * 2.0
    uv_pred = jax.random.normal(ks[3], (bs, n_pts, 2), jnp.float32)
    nocs = jax.random.uniform(ks[4], (bs, n_pts, 3), jnp.float32, -0.5, 0.5)
    model = jax.random.normal(ks[5], (bs, nv, 3), jnp.float32) * 0.2
    seg_gt = jax.random.randint(ks[6], (bs, n_pts), 0, n_cls, jnp.int32)
    mat_gt = jax.nn.softmax(jax.random.normal(ks[7], (bs, n_pts, nv), jnp.float32), axis=2)
    uv_gt = jax.random.normal(ks[8], (bs, n_pts, 2), jnp.float32)

    # unused buffer from the module (kept for fidelity with __init__)
    mask = jnp.ones((3660,), jnp.float32)  # TODO(synk): 'mask' buffer is never used in forward

    out = jax.block_until_ready(
        loss9_forward(assign_mat, seg_pred, ver3d_pred, uv_pred, nocs, model,
                      seg_gt, mat_gt, uv_gt))
    ref = jax.block_until_ready(
        _reference(assign_mat, seg_pred, ver3d_pred, uv_pred, nocs, model,
                   seg_gt, mat_gt, uv_gt))

    for got, want in zip(out, ref):
        assert jnp.allclose(got, want, rtol=1e-4, atol=1e-4), (got, want)

    print("KERNEL_OK")
</pallas_src>

<mosaic_0001>
module attributes {stable_mosaic.version = 11 : i64} {
  func.func @_loss_kernel(%arg0: i32, %arg1: i32, %arg2: memref<1x64x128xf32, #tpu.memory_space<vmem>>, %arg3: memref<1x128x3xf32, #tpu.memory_space<vmem>>, %arg4: memref<1x128x3xf32, #tpu.memory_space<vmem>>, %arg5: memref<1x64x3xf32, #tpu.memory_space<vmem>>, %arg6: memref<1x64x128xf32, #tpu.memory_space<vmem>>, %arg7: memref<1x64x2xf32, #tpu.memory_space<vmem>>, %arg8: memref<1x64x2xf32, #tpu.memory_space<vmem>>, %arg9: memref<1x4x64xf32, #tpu.memory_space<vmem>>, %arg10: memref<1x1x64xi32, #tpu.memory_space<vmem>>, %arg11: memref<1x1x128xf32, #tpu.memory_space<vmem>>, %arg12: memref<1x128xf32, #tpu.memory_space<vmem>>) attributes {dimension_semantics = [#tpu.dimension_semantics<parallel>, #tpu.dimension_semantics<arbitrary>], iteration_bounds = array<i64: 2, 1>, scalar_prefetch = 0 : i64, scratch_operands = 1 : i64, tpu.core_type = #tpu.core_type<tc>, window_params = [{transform_indices = @transform_0, window_bounds = array<i64: 1, 64, 128>}, {transform_indices = @transform_1, window_bounds = array<i64: 1, 128, 3>}, {transform_indices = @transform_2, window_bounds = array<i64: 1, 128, 3>}, {transform_indices = @transform_3, window_bounds = array<i64: 1, 64, 3>}, {transform_indices = @transform_4, window_bounds = array<i64: 1, 64, 128>}, {transform_indices = @transform_5, window_bounds = array<i64: 1, 64, 2>}, {transform_indices = @transform_6, window_bounds = array<i64: 1, 64, 2>}, {transform_indices = @transform_7, window_bounds = array<i64: 1, 4, 64>}, {transform_indices = @transform_8, window_bounds = array<i64: 1, 1, 64>}, {transform_indices = @transform_9, window_bounds = array<i64: 1, 1, 128>}]} {
    %0 = tpu.iota {dimensions = array<i32: 1>} : vector<1x128xi32>
    %c0_i32 = arith.constant 0 : i32
    %1 = arith.cmpi eq, %arg1, %c0_i32 : i32
    %2 = arith.extui %1 : i1 to i32
    %c0_i32_0 = arith.constant 0 : i32
    %3 = arith.cmpi ne, %2, %c0_i32_0 : i32
    scf.if %3 {
      %cst_59 = arith.constant 0.000000e+00 : f32
      %141 = vector.broadcast %cst_59 : f32 to vector<1x128xf32>
      %c0_60 = arith.constant 0 : index
      %c0_61 = arith.constant 0 : index
      %142 = vector.load %arg12[%c0_60, %c0_61] : memref<1x128xf32, #tpu.memory_space<vmem>>, vector<1x128xf32>
      tpu.vector_store %arg12[%c0_60, %c0_61], %141 {strides = array<i32>} : memref<1x128xf32, #tpu.memory_space<vmem>>, vector<1x128xf32>,
      %c0_62 = arith.constant 0 : index
      %c0_63 = arith.constant 0 : index
      %c0_64 = arith.constant 0 : index
      %143 = vector.load %arg3[%c0_62, %c0_63, %c0_64] : memref<1x128x3xf32, #tpu.memory_space<vmem>>, vector<1x128x3xf32>
      %144 = vector.shape_cast %143 : vector<1x128x3xf32> to vector<128x3xf32>
      %c0_65 = arith.constant 0 : index
      %c0_66 = arith.constant 0 : index
      %c0_67 = arith.constant 0 : index
      %145 = vector.load %arg4[%c0_65, %c0_66, %c0_67] : memref<1x128x3xf32, #tpu.memory_space<vmem>>, vector<1x128x3xf32>
      %146 = vector.shape_cast %145 : vector<1x128x3xf32> to vector<128x3xf32>
      %cst_68 = arith.constant 9.000000e+00 : f32
      %147 = vector.broadcast %cst_68 : f32 to vector<128x3xf32>
      %148 = arith.mulf %147, %146 : vector<128x3xf32>
      %149 = arith.subf %144, %148 : vector<128x3xf32>
      %150 = math.absf %149 : vector<128x3xf32>
      %c0_69 = arith.constant 0 : index
      %c0_70 = arith.constant 0 : index
      %151 = vector.load %arg12[%c0_69, %c0_70] : memref<1x128xf32, #tpu.memory_space<vmem>>, vector<1x128xf32>
      %c5_i32 = arith.constant 5 : i32
      %152 = vector.broadcast %c5_i32 : i32 to vector<1x128xi32>
      %153 = arith.cmpi eq, %0, %152 : vector<1x128xi32>
      %cst_71 = arith.constant dense<0.000000e+00> : vector<128xf32>
      %154 = vector.multi_reduction <add>, %150, %cst_71 [1] : vector<128x3xf32> to vector<128xf32>
      %155 = vector.shape_cast %154 : vector<128xf32> to vector<128x1xf32>
      %cst_72 = arith.constant dense<0.000000e+00> : vector<1xf32>
      %156 = vector.multi_reduction <add>, %155, %cst_72 [0] : vector<128x1xf32> to vector<1xf32>
      %157 = vector.shape_cast %156 : vector<1xf32> to vector<1x1xf32>
      %cst_73 = arith.constant 0.000000e+00 : f32
      %158 = vector.shape_cast %157 : vector<1x1xf32> to vector<1x1xf32>
      %159 = vector.broadcast %158 : vector<1x1xf32> to vector<1x128xf32>
      %160 = vector.broadcast %cst_73 : f32 to vector<1x128xf32>
      %161 = arith.select %153, %159, %160 : vector<1x128xi1>, vector<1x128xf32>
      %162 = arith.addf %151, %161 : vector<1x128xf32>
      %c0_74 = arith.constant 0 : index
      %c0_75 = arith.constant 0 : index
      %163 = vector.load %arg12[%c0_74, %c0_75] : memref<1x128xf32, #tpu.memory_space<vmem>>, vector<1x128xf32>
      tpu.vector_store %arg12[%c0_74, %c0_75], %162 {strides = array<i32>} : memref<1x128xf32, #tpu.memory_space<vmem>>, vector<1x128xf32>,
    } else {
    }
    %c0 = arith.constant 0 : index
    %c0_1 = arith.constant 0 : index
    %c0_2 = arith.constant 0 : index
    %4 = vector.load %arg2[%c0, %c0_1, %c0_2] : memref<1x64x128xf32, #tpu.memory_space<vmem>>, vector<1x64x128xf32>
    %5 = vector.shape_cast %4 : vector<1x64x128xf32> to vector<64x128xf32>
    %cst = arith.constant dense<0xFF800000> : vector<64xf32>
    %6 = vector.multi_reduction <maximumf>, %5, %cst [1] : vector<64x128xf32> to vector<64xf32>
    %7 = vector.shape_cast %6 : vector<64xf32> to vector<64x1xf32>
    %8 = vector.broadcast %7 : vector<64x1xf32> to vector<64x128xf32>
    %9 = arith.subf %5, %8 : vector<64x128xf32>
    %10 = math.exp %9 : vector<64x128xf32>
    %cst_3 = arith.constant dense<0.000000e+00> : vector<64xf32>
    %11 = vector.multi_reduction <add>, %10, %cst_3 [1] : vector<64x128xf32> to vector<64xf32>
    %12 = vector.shape_cast %11 : vector<64xf32> to vector<64x1xf32>
    %13 = tpu.reciprocal %12 : vector<64x1xf32> -> vector<64x1xf32>
    %14 = vector.broadcast %13 : vector<64x1xf32> to vector<64x128xf32>
    %15 = arith.mulf %10, %14 : vector<64x128xf32>
    %16 = math.log %12 : vector<64x1xf32>
    %17 = vector.broadcast %16 : vector<64x1xf32> to vector<64x128xf32>
    %18 = arith.subf %9, %17 : vector<64x128xf32>
    %c0_4 = arith.constant 0 : index
    %c0_5 = arith.constant 0 : index
    %c0_6 = arith.constant 0 : index
    %19 = vector.load %arg3[%c0_4, %c0_5, %c0_6] : memref<1x128x3xf32, #tpu.memory_space<vmem>>, vector<1x128x3xf32>
    %20 = vector.shape_cast %19 : vector<1x128x3xf32> to vector<128x3xf32>
    %cst_7 = arith.constant 5.000000e-01 : f32
    %21 = vector.broadcast %cst_7 : f32 to vector<128x3xf32>
    %22 = arith.mulf %20, %21 : vector<128x3xf32>
    %cst_8 = arith.constant dense<0.000000e+00> : vector<64x3xf32>
    %23 = tpu.matmul %15, %22, %cst_8 {dimension_numbers = #tpu.dot_dimension_numbers<[1], [0], [0], [1], [0, 0, 1, 1], [], []>} : vector<64x128xf32>, vector<128x3xf32>, vector<64x3xf32> -> vector<64x3xf32>
    %c0_9 = arith.constant 0 : index
    %c0_10 = arith.constant 0 : index
    %c0_11 = arith.constant 0 : index
    %24 = vector.load %arg5[%c0_9, %c0_10, %c0_11] : memref<1x64x3xf32, #tpu.memory_space<vmem>>, vector<1x64x3xf32>
    %25 = vector.shape_cast %24 : vector<1x64x3xf32> to vector<64x3xf32>
    %26 = arith.subf %23, %25 : vector<64x3xf32>
    %27 = math.absf %26 : vector<64x3xf32>
    %28 = arith.mulf %27, %27 : vector<64x3xf32>
    %cst_12 = arith.constant 5.000000e+01 : f32
    %29 = vector.broadcast %cst_12 : f32 to vector<64x3xf32>
    %30 = arith.mulf %28, %29 : vector<64x3xf32>
    %cst_13 = arith.constant 5.000000e-03 : f32
    %31 = vector.broadcast %cst_13 : f32 to vector<64x3xf32>
    %32 = arith.subf %27, %31 : vector<64x3xf32>
    %cst_14 = arith.constant 0.00999999977 : f32
    %33 = vector.broadcast %cst_14 : f32 to vector<64x3xf32>
    %34 = arith.cmpf ogt, %27, %33 : vector<64x3xf32>
    %35 = arith.select %34, %32, %30 : vector<64x3xi1>, vector<64x3xf32>
    %cst_15 = arith.constant dense<0.000000e+00> : vector<64xf32>
    %36 = vector.multi_reduction <add>, %35, %cst_15 [1] : vector<64x3xf32> to vector<64xf32>
    %37 = vector.shape_cast %36 : vector<64xf32> to vector<64x1xf32>
    %cst_16 = arith.constant dense<0.000000e+00> : vector<1xf32>
    %38 = vector.multi_reduction <add>, %37, %cst_16 [0] : vector<64x1xf32> to vector<1xf32>
    %39 = vector.shape_cast %38 : vector<1xf32> to vector<1x1xf32>
    %c0_17 = arith.constant 0 : index
    %c0_18 = arith.constant 0 : index
    %c0_19 = arith.constant 0 : index
    %40 = vector.load %arg6[%c0_17, %c0_18, %c0_19] : memref<1x64x128xf32, #tpu.memory_space<vmem>>, vector<1x64x128xf32>
    %41 = vector.shape_cast %40 : vector<1x64x128xf32> to vector<64x128xf32>
    %cst_20 = arith.constant 0.000000e+00 : f32
    %42 = vector.broadcast %cst_20 : f32 to vector<64x128xf32>
    %43 = arith.cmpf ogt, %41, %42 : vector<64x128xf32>
    %cst_21 = arith.constant 1.000000e-30 : f32
    %44 = vector.broadcast %cst_21 : f32 to vector<64x128xf32>
    %45 = arith.maximumf %41, %44 : vector<64x128xf32>
    %46 = math.log %45 : vector<64x128xf32>
    %47 = arith.mulf %41, %46 : vector<64x128xf32>
    %cst_22 = arith.constant 0.000000e+00 : f32
    %48 = vector.broadcast %cst_22 : f32 to vector<64x128xf32>
    %49 = arith.select %43, %47, %48 : vector<64x128xi1>, vector<64x128xf32>
    %50 = arith.mulf %41, %18 : vector<64x128xf32>
    %51 = arith.subf %49, %50 : vector<64x128xf32>
    %cst_23 = arith.constant dense<0.000000e+00> : vector<64xf32>
    %52 = vector.multi_reduction <add>, %51, %cst_23 [1] : vector<64x128xf32> to vector<64xf32>
    %53 = vector.shape_cast %52 : vector<64xf32> to vector<64x1xf32>
    %cst_24 = arith.constant dense<0.000000e+00> : vector<1xf32>
    %54 = vector.multi_reduction <add>, %53, %cst_24 [0] : vector<64x1xf32> to vector<1xf32>
    %55 = vector.shape_cast %54 : vector<1xf32> to vector<1x1xf32>
    %56 = arith.mulf %15, %18 : vector<64x128xf32>
    %cst_25 = arith.constant 0.000000e+00 : f32
    %57 = vector.broadcast %cst_25 : f32 to vector<64x128xf32>
    %58 = arith.subf %57, %56 : vector<64x128xf32>
    %cst_26 = arith.constant dense<0.000000e+00> : vector<64xf32>
    %59 = vector.multi_reduction <add>, %58, %cst_26 [1] : vector<64x128xf32> to vector<64xf32>
    %60 = vector.shape_cast %59 : vector<64xf32> to vector<64x1xf32>
    %cst_27 = arith.constant dense<0.000000e+00> : vector<1xf32>
    %61 = vector.multi_reduction <add>, %60, %cst_27 [0] : vector<64x1xf32> to vector<1xf32>
    %62 = vector.shape_cast %61 : vector<1xf32> to vector<1x1xf32>
    %c0_28 = arith.constant 0 : index
    %c0_29 = arith.constant 0 : index
    %c0_30 = arith.constant 0 : index
    %63 = vector.load %arg7[%c0_28, %c0_29, %c0_30] : memref<1x64x2xf32, #tpu.memory_space<vmem>>, vector<1x64x2xf32>
    %64 = vector.shape_cast %63 : vector<1x64x2xf32> to vector<64x2xf32>
    %c0_31 = arith.constant 0 : index
    %c0_32 = arith.constant 0 : index
    %c0_33 = arith.constant 0 : index
    %65 = vector.load %arg8[%c0_31, %c0_32, %c0_33] : memref<1x64x2xf32, #tpu.memory_space<vmem>>, vector<1x64x2xf32>
    %66 = vector.shape_cast %65 : vector<1x64x2xf32> to vector<64x2xf32>
    %67 = arith.subf %64, %66 : vector<64x2xf32>
    %68 = math.absf %67 : vector<64x2xf32>
    %cst_34 = arith.constant dense<0.000000e+00> : vector<64xf32>
    %69 = vector.multi_reduction <add>, %68, %cst_34 [1] : vector<64x2xf32> to vector<64xf32>
    %70 = vector.shape_cast %69 : vector<64xf32> to vector<64x1xf32>
    %cst_35 = arith.constant dense<0.000000e+00> : vector<1xf32>
    %71 = vector.multi_reduction <add>, %70, %cst_35 [0] : vector<64x1xf32> to vector<1xf32>
    %72 = vector.shape_cast %71 : vector<1xf32> to vector<1x1xf32>
    %c0_36 = arith.constant 0 : index
    %c0_37 = arith.constant 0 : index
    %c0_38 = arith.constant 0 : index
    %73 = vector.load %arg9[%c0_36, %c0_37, %c0_38] : memref<1x4x64xf32, #tpu.memory_space<vmem>>, vector<1x4x64xf32>
    %74 = vector.shape_cast %73 : vector<1x4x64xf32> to vector<4x64xf32>
    %cst_39 = arith.constant dense<0xFF800000> : vector<64xf32>
    %75 = vector.multi_reduction <maximumf>, %74, %cst_39 [0] : vector<4x64xf32> to vector<64xf32>
    %76 = vector.shape_cast %75 : vector<64xf32> to vector<1x64xf32>
    %77 = vector.broadcast %76 : vector<1x64xf32> to vector<4x64xf32>
    %78 = arith.subf %74, %77 : vector<4x64xf32>
    %79 = vector.broadcast %76 : vector<1x64xf32> to vector<4x64xf32>
    %80 = arith.subf %74, %79 : vector<4x64xf32>
    %81 = math.exp %80 : vector<4x64xf32>
    %cst_40 = arith.constant dense<0.000000e+00> : vector<64xf32>
    %82 = vector.multi_reduction <add>, %81, %cst_40 [0] : vector<4x64xf32> to vector<64xf32>
    %83 = vector.shape_cast %82 : vector<64xf32> to vector<1x64xf32>
    %84 = math.log %83 : vector<1x64xf32>
    %85 = vector.broadcast %84 : vector<1x64xf32> to vector<4x64xf32>
    %86 = arith.subf %78, %85 : vector<4x64xf32>
    %c0_41 = arith.constant 0 : index
    %c0_42 = arith.constant 0 : index
    %c0_43 = arith.constant 0 : index
    %87 = vector.load %arg10[%c0_41, %c0_42, %c0_43] : memref<1x1x64xi32, #tpu.memory_space<vmem>>, vector<1x1x64xi32>
    %88 = vector.shape_cast %87 : vector<1x1x64xi32> to vector<1x64xi32>
    %89 = tpu.iota {dimensions = array<i32: 0>} : vector<4x64xi32>
    %90 = vector.broadcast %88 : vector<1x64xi32> to vector<4x64xi32>
    %91 = arith.cmpi eq, %89, %90 : vector<4x64xi32>
    %92 = arith.extui %91 : vector<4x64xi1> to vector<4x64xi32>
    %93 = arith.sitofp %92 : vector<4x64xi32> to vector<4x64xf32>
    %94 = arith.mulf %93, %86 : vector<4x64xf32>
    %cst_44 = arith.constant 0.000000e+00 : f32
    %95 = vector.broadcast %cst_44 : f32 to vector<4x64xf32>
    %96 = arith.subf %95, %94 : vector<4x64xf32>
    %cst_45 = arith.constant dense<0.000000e+00> : vector<4xf32>
    %97 = vector.multi_reduction <add>, %96, %cst_45 [1] : vector<4x64xf32> to vector<4xf32>
    %98 = vector.shape_cast %97 : vector<4xf32> to vector<4x1xf32>
    %cst_46 = arith.constant dense<0.000000e+00> : vector<1xf32>
    %99 = vector.multi_reduction <add>, %98, %cst_46 [0] : vector<4x1xf32> to vector<1xf32>
    %100 = vector.shape_cast %99 : vector<1xf32> to vector<1x1xf32>
    %c0_47 = arith.constant 0 : index
    %c0_48 = arith.constant 0 : index
    %101 = vector.load %arg12[%c0_47, %c0_48] : memref<1x128xf32, #tpu.memory_space<vmem>>, vector<1x128xf32>
    %c0_i32_49 = arith.constant 0 : i32
    %102 = vector.broadcast %c0_i32_49 : i32 to vector<1x128xi32>
    %103 = arith.cmpi eq, %0, %102 : vector<1x128xi32>
    %cst_50 = arith.constant 0.000000e+00 : f32
    %104 = vector.shape_cast %39 : vector<1x1xf32> to vector<1x1xf32>
    %105 = vector.broadcast %104 : vector<1x1xf32> to vector<1x128xf32>
    %106 = vector.broadcast %cst_50 : f32 to vector<1x128xf32>
    %107 = arith.select %103, %105, %106 : vector<1x128xi1>, vector<1x128xf32>
    %c1_i32 = arith.constant 1 : i32
    %108 = vector.broadcast %c1_i32 : i32 to vector<1x128xi32>
    %109 = arith.cmpi eq, %0, %108 : vector<1x128xi32>
    %cst_51 = arith.constant 0.000000e+00 : f32
    %110 = vector.shape_cast %55 : vector<1x1xf32> to vector<1x1xf32>
    %111 = vector.broadcast %110 : vector<1x1xf32> to vector<1x128xf32>
    %112 = vector.broadcast %cst_51 : f32 to vector<1x128xf32>
    %113 = arith.select %109, %111, %112 : vector<1x128xi1>, vector<1x128xf32>
    %114 = arith.addf %107, %113 : vector<1x128xf32>
    %c2_i32 = arith.constant 2 : i32
    %115 = vector.broadcast %c2_i32 : i32 to vector<1x128xi32>
    %116 = arith.cmpi eq, %0, %115 : vector<1x128xi32>
    %cst_52 = arith.constant 0.000000e+00 : f32
    %117 = vector.shape_cast %62 : vector<1x1xf32> to vector<1x1xf32>
    %118 = vector.broadcast %117 : vector<1x1xf32> to vector<1x128xf32>
    %119 = vector.broadcast %cst_52 : f32 to vector<1x128xf32>
    %120 = arith.select %116, %118, %119 : vector<1x128xi1>, vector<1x128xf32>
    %121 = arith.addf %114, %120 : vector<1x128xf32>
    %c3_i32 = arith.constant 3 : i32
    %122 = vector.broadcast %c3_i32 : i32 to vector<1x128xi32>
    %123 = arith.cmpi eq, %0, %122 : vector<1x128xi32>
    %cst_53 = arith.constant 0.000000e+00 : f32
    %124 = vector.shape_cast %72 : vector<1x1xf32> to vector<1x1xf32>
    %125 = vector.broadcast %124 : vector<1x1xf32> to vector<1x128xf32>
    %126 = vector.broadcast %cst_53 : f32 to vector<1x128xf32>
    %127 = arith.select %123, %125, %126 : vector<1x128xi1>, vector<1x128xf32>
    %128 = arith.addf %121, %127 : vector<1x128xf32>
    %c4_i32 = arith.constant 4 : i32
    %129 = vector.broadcast %c4_i32 : i32 to vector<1x128xi32>
    %130 = arith.cmpi eq, %0, %129 : vector<1x128xi32>
    %cst_54 = arith.constant 0.000000e+00 : f32
    %131 = vector.shape_cast %100 : vector<1x1xf32> to vector<1x1xf32>
    %132 = vector.broadcast %131 : vector<1x1xf32> to vector<1x128xf32>
    %133 = vector.broadcast %cst_54 : f32 to vector<1x128xf32>
    %134 = arith.select %130, %132, %133 : vector<1x128xi1>, vector<1x128xf32>
    %135 = arith.addf %128, %134 : vector<1x128xf32>
    %136 = arith.addf %101, %135 : vector<1x128xf32>
    %c0_55 = arith.constant 0 : index
    %c0_56 = arith.constant 0 : index
    %137 = vector.load %arg12[%c0_55, %c0_56] : memref<1x128xf32, #tpu.memory_space<vmem>>, vector<1x128xf32>
    tpu.vector_store %arg12[%c0_55, %c0_56], %136 {strides = array<i32>} : memref<1x128xf32, #tpu.memory_space<vmem>>, vector<1x128xf32>,
    %c0_i32_57 = arith.constant 0 : i32
    %138 = arith.cmpi eq, %arg1, %c0_i32_57 : i32
    %139 = arith.extui %138 : i1 to i32
    %c0_i32_58 = arith.constant 0 : i32
    %140 = arith.cmpi ne, %139, %c0_i32_58 : i32
    scf.if %140 {
      %c0_59 = arith.constant 0 : index
      %c0_60 = arith.constant 0 : index
      %141 = vector.load %arg12[%c0_59, %c0_60] : memref<1x128xf32, #tpu.memory_space<vmem>>, vector<1x128xf32>
      %142 = vector.shape_cast %141 : vector<1x128xf32> to vector<1x1x128xf32>
      %c0_61 = arith.constant 0 : index
      %c0_62 = arith.constant 0 : index
      %c0_63 = arith.constant 0 : index
      %143 = vector.load %arg11[%c0_61, %c0_62, %c0_63] : memref<1x1x128xf32, #tpu.memory_space<vmem>>, vector<1x1x128xf32>
      tpu.vector_store %arg11[%c0_61, %c0_62, %c0_63], %142 {strides = array<i32>} : memref<1x1x128xf32, #tpu.memory_space<vmem>>, vector<1x1x128xf32>,
    } else {
    }
    return
  }
  func.func @transform_0(%arg0: i32, %arg1: i32) -> (i32, i32, i32) {
    %c0_i32 = arith.constant 0 : i32
    %c0_i32_0 = arith.constant 0 : i32
    return %arg0, %arg1, %c0_i32 : i32, i32, i32
  }
  func.func @transform_1(%arg0: i32, %arg1: i32) -> (i32, i32, i32) {
    %c0_i32 = arith.constant 0 : i32
    %c0_i32_0 = arith.constant 0 : i32
    %c0_i32_1 = arith.constant 0 : i32
    return %arg0, %c0_i32, %c0_i32_0 : i32, i32, i32
  }
  func.func @transform_2(%arg0: i32, %arg1: i32) -> (i32, i32, i32) {
    %c0_i32 = arith.constant 0 : i32
    %c0_i32_0 = arith.constant 0 : i32
    %c0_i32_1 = arith.constant 0 : i32
    return %arg0, %c0_i32, %c0_i32_0 : i32, i32, i32
  }
  func.func @transform_3(%arg0: i32, %arg1: i32) -> (i32, i32, i32) {
    %c0_i32 = arith.constant 0 : i32
    %c0_i32_0 = arith.constant 0 : i32
    return %arg0, %arg1, %c0_i32 : i32, i32, i32
  }
  func.func @transform_4(%arg0: i32, %arg1: i32) -> (i32, i32, i32) {
    %c0_i32 = arith.constant 0 : i32
    %c0_i32_0 = arith.constant 0 : i32
    return %arg0, %arg1, %c0_i32 : i32, i32, i32
  }
  func.func @transform_5(%arg0: i32, %arg1: i32) -> (i32, i32, i32) {
    %c0_i32 = arith.constant 0 : i32
    %c0_i32_0 = arith.constant 0 : i32
    return %arg0, %arg1, %c0_i32 : i32, i32, i32
  }
  func.func @transform_6(%arg0: i32, %arg1: i32) -> (i32, i32, i32) {
    %c0_i32 = arith.constant 0 : i32
    %c0_i32_0 = arith.constant 0 : i32
    return %arg0, %arg1, %c0_i32 : i32, i32, i32
  }
  func.func @transform_7(%arg0: i32, %arg1: i32) -> (i32, i32, i32) {
    %c0_i32 = arith.constant 0 : i32
    %c0_i32_0 = arith.constant 0 : i32
    return %arg0, %c0_i32, %arg1 : i32, i32, i32
  }
  func.func @transform_8(%arg0: i32, %arg1: i32) -> (i32, i32, i32) {
    %c0_i32 = arith.constant 0 : i32
    %c0_i32_0 = arith.constant 0 : i32
    return %arg0, %c0_i32, %arg1 : i32, i32, i32
  }
  func.func @transform_9(%arg0: i32, %arg1: i32) -> (i32, i32, i32) {
    %c0_i32 = arith.constant 0 : i32
    %c0_i32_0 = arith.constant 0 : i32
    %c0_i32_1 = arith.constant 0 : i32
    return %arg0, %c0_i32, %c0_i32_0 : i32, i32, i32
  }
}

</mosaic_0001>

<bundles_post_ra>
// kernel: tpu_custom_call.1
= control target key start
LH: loop header
LB: loop body
LE: loop exit
PB: predicated region body
PF: predicated region fallthrough
CT: control target
= control target key end

     0   :  { %14 = vsyncpa [#allocation4], 0  ;;  %s2579_s0 = inlined_call_operand.vmem [shape: f32[2,64,128], index: 0, kind: input, shape index: {}]   ;;  %s2580_s1 = inlined_call_operand.vmem [shape: f32[2,128,3], index: 1, kind: input, shape index: {}]   ;;  %s2581_s2 = inlined_call_operand.vmem [shape: f32[2,128,3], index: 2, kind: input, shape index: {}]   ;;  %s2582_s3 = inlined_call_operand.vmem [shape: f32[2,64,3], index: 3, kind: input, shape index: {}]   ;;  %s2583_s4 = inlined_call_operand.vmem [shape: f32[2,64,128], index: 4, kind: input, shape index: {}]   ;;  %s2584_s5 = inlined_call_operand.vmem [shape: f32[2,64,2], index: 5, kind: input, shape index: {}]   ;;  %s2585_s6 = inlined_call_operand.vmem [shape: f32[2,64,2], index: 6, kind: input, shape index: {}]   ;;  %s2586_s7 = inlined_call_operand.vmem [shape: f32[2,4,64], index: 7, kind: input, shape index: {}]   ;;  %s2587_s8 = inlined_call_operand.vmem [shape: s32[2,1,64], index: 8, kind: input, shape index: {}]   ;;  %s2588_s9 = inlined_call_operand.hbm [shape: f32[2,1,128], index: 9, kind: output, shape index: {}]  }
   0x1   :  { %16 = vsyncpa [#allocation4 + $0x1], 0  ;;  %s2000_s30 = smov 0   ;;  %s2002_s10 = smov 0  }
   0x2   :  { %s2004_s11 = smov 0   ;;  %s2006_s12 = smov 0  }
   0x3   :  { %s2008_s13 = smov 0   ;;  %s2010_s14 = smov 0  }
   0x4 LB: > { %s1588_s15 = sadd.s32 4294967295, %s1946_s14   ;;  %s1589_s16 = sadd.s32 4294967294, %s1946_s14   ;;  %s1946_s14 = sphi %s2010_s14, %s22_s14   ;;  %s1942_s13 = sphi %s2008_s13, %s2595_s13   ;;  %s1938_s12 = sphi %s2006_s12, %s2594_s12   ;;  %s1934_s11 = sphi %s2004_s11, %s2593_s11   ;;  %s1930_s10 = sphi %s2002_s10, %s2592_s10   ;;  %s1926_s30 = sphi %s2000_s30, %s2591_s30  }
   0x5   : > { %s34_s17 = sadd.s32 1, %s1942_s13  ;;  %s289_s18 = sadd.s32 1, %s1934_s11 }
   0x6   : > { %p36_p0 = scmp.ge.s32.totalorder %s34_s17, 2  ;;  %p299_p1 = scmp.ne.s32.totalorder %s1934_s11, %s1930_s10 }
   0x7   : > { %p300_p2 = scmp.eq.s32.totalorder %s1588_s15, 1  ;;  %p305_p3 = scmp.ne.s32.totalorder %s1930_s10, %s1926_s30 }
   0x8   : > { %s2597_s17 = smov (%p36_p0, %s34_s17), 0  ;;  %p306_p5 = scmp.eq.s32.totalorder %s1589_s16, 1 }
   0x9   : > { %p2040_p4 = por %p300_p2, %p299_p1  ;;  %s286_s20 = ssub.s32 %s1942_s13, %s2597_s17 }
   0xa   : > { %p1592_p6 = scmp.ge.s32.totalorder %s1946_s14, 1  ;;  %p287_p7 = scmp.eq.s32.totalorder %s286_s20, 0 }
   0xb   : > { %p2047_p8 = por %p306_p5, %p305_p3  ;;  %p424_p9 = scmp.lt.s32.totalorder %s1946_s14, 3 }
   0xc   : > { %s2053_s22 = scalar_select %p287_p7, %s1934_s11, %s289_s18  }
   0xd   : > { %p425_p10 = pnand %p1592_p6, %p424_p9 }
   0xe   : > { %p523_p11 = scmp.lt.s32.totalorder (!%p425_p10), %s1938_s12, 1  ;;  %vm684_vm0 = vcmask (!%p425_p10), 23552   ;;  %vm1278_vm1 = vcmask (!%p425_p10), 15360   ;;  %vm1317_vm11 = vcmask (!%p425_p10), 519168  }
   0xf   : > { %428 = sbr.rel (%p425_p10) target bundleno = 783 (0x30f), region = 56 }
  0x16   : > { %s2057_s23 = scalar_select %p523_p11, %s1938_s12, 1 }
  0x18   : > { %s2060_s24 = sshll.u32 %s2057_s23, 6  ;;  %s1622_s28 = sshll.u32 %s2057_s23, 7 }
  0x19   : > { %s530_s27 = scalar_lea.vmem %s2579_s0, %s2060_s24  ;;  %s2094_s16 = scalar_lea.vmem %s2580_s1, %s1622_s28 }
  0x1a   : > { %v2066_v0 = vld [vmem:[%s530_s27] sm:$0xff]  ;;  %v2068_v1 = vld [vmem:[%s530_s27 + $0x10] sm:$0xff]  ;;  %v2072_v2 = vld [vmem:[%s530_s27 + $0x8] sm:$0xff]  ;;  %s2099_s25 = scalar_lea.vmem %s2581_s2, %s1622_s28  ;;  %s2285_s28 = scalar_lea.vmem %s2584_s5, %s2060_s24 }
  0x1b   : > { %765 = vmax.xlane.f32.xlu0 %v2066_v0  ;;  %769 = vmax.xlane.f32.xlu1 %v2068_v1  ;;  %v2074_v3 = vld [vmem:[%s530_s27 + $0x18] sm:$0xff]  ;;  %v2078_v4 = vld [vmem:[%s530_s27 + $0x20] sm:$0xff]  ;;  %v2080_v5 = vld [vmem:[%s530_s27 + $0x28] sm:$0xff]  ;;  %s2291_s18 = scalar_lea.vmem %s2585_s6, %s2060_s24  ;;  %s1607_s26 = sshll.u32 %s2057_s23, 2 }
  0x1c   : > { %v2084_v6 = vld [vmem:[%s530_s27 + $0x30] sm:$0xff]  ;;  %v2086_v7 = vld [vmem:[%s530_s27 + $0x38] sm:$0xff]  ;;  %v2102_v8 = vld [vmem:[%s2094_s16] sm:$0xff]  ;;  %s588_s15 = scalar_lea.vmem %s2586_s7, %s1607_s26  ;;  %s594_s27 = scalar_lea.vmem %s2587_s8, %s2057_s23 }
  0x1d   : > { %v618_v9 = vld [vmem:[%s2099_s25] sm:$0xff]  ;;  %v2108_v11 = vld [vmem:[%s2094_s16 + $0x10] sm:$0xff]  ;;  %v2118_v16 = vld [vmem:[%s2094_s16 + $0x8] sm:$0xff]  ;;  %v877_v24 = vmul.f32 0.5, %v2102_v8  ;;  %s520_s23 = sand.u32 1, %s1930_s10  }
  0x1e   : > { %v2105_v10 = vmul.f32 9.0, %v618_v9  ;;  %v620_v12 = vld [vmem:[%s2099_s25 + $0x10] sm:$0xff]  ;;  %v619_v17 = vld [vmem:[%s2099_s25 + $0x8] sm:$0xff]  ;;  %v2124_v19 = vld [vmem:[%s2094_s16 + $0x20] sm:$0xff]  ;;  %v878_v25 = vmul.f32 0.5, %v2118_v16  ;;  %v879_v35 = vmul.f32 0.5, %v2108_v11 }
  0x1f   : > { %767 = vmax.xlane.f32.xlu0 %v2072_v2  ;;  %771 = vmax.xlane.f32.xlu1 %v2074_v3  ;;  %v2111_v13 = vmul.f32 9.0, %v620_v12  ;;  %v2121_v18 = vmul.f32 9.0, %v619_v17  ;;  %v622_v20 = vld [vmem:[%s2099_s25 + $0x20] sm:$0xff]  ;;  %v2136_v26 = vld [vmem:[%s2094_s16 + $0x18] sm:$0xff]  ;;  %v2142_v29 = vld [vmem:[%s2094_s16 + $0x30] sm:$0xff]  ;;  %v881_v42 = vmul.f32 0.5, %v2124_v19 }
  0x20   : > { %v650_v14 = vsub.f32 %v2102_v8, %v2105_v10  ;;  %v2127_v21 = vmul.f32 9.0, %v622_v20  ;;  %v621_v27 = vld [vmem:[%s2099_s25 + $0x18] sm:$0xff]  ;;  %v624_v30 = vld [vmem:[%s2099_s25 + $0x30] sm:$0xff]  ;;  %v1696_v31 = vpack.c.bf16 %v878_v25, %v877_v24  ;;  %v880_v36 = vmul.f32 0.5, %v2136_v26  ;;  %v2154_v37 = vld [vmem:[%s2094_s16 + $0x28] sm:$0xff] }
  0x21   : > { %v652_v15 = vsub.f32 %v2108_v11, %v2111_v13  ;;  %v651_v22 = vsub.f32 %v2118_v16, %v2121_v18  ;;  %v2139_v28 = vmul.f32 9.0, %v621_v27  ;;  %v2145_v32 = vmul.f32 9.0, %v624_v30  ;;  %v623_v38 = vld [vmem:[%s2099_s25 + $0x28] sm:$0xff]  ;;  %v2164_v44 = vld [vmem:[%s2094_s16 + $0x38] sm:$0xff]  ;;  %v612_v18 = vld [vmem:[%s2094_s16 + $0x50] sm:$0xff] }
  0x22   : > { %v654_v23 = vsub.f32 %v2124_v19, %v2127_v21  ;;  %1697 = vmatprep.subr.bf16.mxu0 %v1696_v31  ;;  %1728 = vmatprep.subr.bf16.mxu1 %v1696_v31  ;;  %v2157_v39 = vmul.f32 9.0, %v623_v38  ;;  %v1700_v40 = vpack.c.bf16 %v880_v36, %v879_v35  ;;  %v882_v43 = vmul.f32 0.5, %v2154_v37  ;;  %v625_v45 = vld [vmem:[%s2099_s25 + $0x38] sm:$0xff] }
  0x23   : > { %773 = vmax.xlane.f32.xlu0 %v2078_v4  ;;  %775 = vmax.xlane.f32.xlu1 %v2080_v5  ;;  %v653_v33 = vsub.f32 %v2136_v26, %v2139_v28  ;;  %v656_v34 = vsub.f32 %v2142_v29, %v2145_v32  ;;  %v2167_v46 = vmul.f32 9.0, %v625_v45  ;;  %v883_v49 = vmul.f32 0.5, %v2142_v29  ;;  %v629_v29 = vld [vmem:[%s2099_s25 + $0x58] sm:$0xff] }
  0x24   : > { %1699 = vmatpush3.bf16.msra.mxu0 %v1696_v31  ;;  %1736 = vmatpush3.bf16.msra.mxu1 %v1696_v31  ;;  %v655_v41 = vsub.f32 %v2154_v37, %v2157_v39  ;;  %v1704_v47 = vpack.c.bf16 %v882_v43, %v881_v42  ;;  %v884_v50 = vmul.f32 0.5, %v2164_v44  ;;  %v666_v36 = vand.u32 2147483647, %v650_v14  ;;  %v2229_v42 = vld [vmem:[%s2094_s16 + $0x48] sm:$0xff] }
  0x25   : > { %1701 = vmatprep.subr.bf16.mxu0 %v1700_v40  ;;  %1729 = vmatprep.subr.bf16.mxu1 %v1700_v40  ;;  %v657_v48 = vsub.f32 %v2164_v44, %v2167_v46  ;;  %v668_v43 = vand.u32 2147483647, %v652_v15  ;;  %v886_v8 = vmul.f32 0.5, %v2229_v42  ;;  %v670_v13 = vand.u32 2147483647, %v654_v23 }
  0x26   : > { %v1708_v51 = vpack.c.bf16 %v884_v50, %v883_v49  ;;  %v685_v14 = vsel %vm684_vm0, %v666_v36, 0.0  ;;  %v626_v49 = vld [vmem:[%s2099_s25 + $0x40] sm:$0xff]  ;;  %v669_v16 = vand.u32 2147483647, %v653_v33  ;;  %v887_v19 = vmul.f32 0.5, %v612_v18  ;;  %v2295_v36 = vld [vmem:[%s2094_s16 + $0x78] sm:$0xff] }
  0x27   : > { %777 = vmax.xlane.f32.xlu0 %v2084_v6  ;;  %779 = vmax.xlane.f32.xlu1 %v2086_v7  ;;  %v691_v11 = vsel %vm684_vm0, %v668_v43, 0.0  ;;  %v642_v15 = vmul.f32 9.0, %v626_v49  ;;  %v672_v23 = vand.u32 2147483647, %v656_v34  ;;  %v671_v26 = vand.u32 2147483647, %v655_v41 }
  0x28   : > { %1703 = vmatpush3.bf16.msra.mxu0 %v1700_v40  ;;  %1737 = vmatpush3.bf16.msra.mxu1 %v1700_v40  ;;  %v610_v40 = vld [vmem:[%s2094_s16 + $0x40] sm:$0xff]  ;;  %v892_v46 = vmul.f32 0.5, %v2295_v36 }
  0x29   : > { %1705 = vmatprep.subr.bf16.mxu0 %v1704_v47  ;;  %1730 = vmatprep.subr.bf16.mxu1 %v1704_v47  ;;  %v885_v45 = vmul.f32 0.5, %v610_v40  ;;  %v658_v28 = vsub.f32 %v610_v40, %v642_v15  ;;  %v703_v37 = vsel %vm684_vm0, %v672_v23, 0.0  ;;  %v700_v39 = vsel %vm684_vm0, %v671_v26, 0.0  ;;  %v1254_v43 = vld [vmem:[%s2291_s18] sm:$0xff]  ;;  %v632_v15 = vld [vmem:[%s2099_s25 + $0x70] sm:$0xff] }
  0x2b   : > { %v1712_v50 = vpack.c.bf16 %v886_v8, %v885_v45  ;;  %v674_v41 = vand.u32 2147483647, %v658_v28 }
  0x2c   : > { %1707 = vmatpush3.bf16.msra.mxu0 %v1704_v47  ;;  %1738 = vmatpush3.bf16.msra.mxu1 %v1704_v47  ;;  %v667_v47 = vand.u32 2147483647, %v651_v22  ;;  %v628_v22 = vld [vmem:[%s2099_s25 + $0x50] sm:$0xff] }
  0x2d   : > { %1709 = vmatprep.subr.bf16.mxu0 %v1708_v51  ;;  %1731 = vmatprep.subr.bf16.mxu1 %v1708_v51  ;;  %v644_v33 = vmul.f32 9.0, %v628_v22 }
  0x30   : > { %1711 = vmatpush3.bf16.msra.mxu0 %v1708_v51  ;;  %1739 = vmatpush3.bf16.msra.mxu1 %v1708_v51  ;;  %v688_v51 = vsel %vm684_vm0, %v667_v47, 0.0 }
  0x31   : > { %1713 = vmatprep.subr.bf16.mxu0 %v1712_v50  ;;  %1732 = vmatprep.subr.bf16.mxu1 %v1712_v50 }
  0x34   : > { %1715 = vmatpush3.bf16.msra.mxu0 %v1712_v50  ;;  %1740 = vmatpush3.bf16.msra.mxu1 %v1712_v50  ;;  %v1247_v50 = vld [vmem:[%s2285_s28 + $0x8] sm:$0xff] }
  0xa8   : > { %v766_v52 = vpop.xlane.xlu0 %765  ;;  %v770_v53 = vpop.xlane.xlu1 %769 }
  0xa9   : > { %v2174_v54 = vsub.f32 %v2066_v0, %v766_v52  ;;  %v2177_v55 = vsub.f32 %v2068_v1, %v770_v53  ;;  %v2256_v52 = vld [vmem:[%s2094_s16 + $0x58] sm:$0xff]  ;;  %v627_v53 = vld [vmem:[%s2099_s25 + $0x48] sm:$0xff] }
  0xaa   : > { %v888_v21 = vmul.f32 0.5, %v2256_v52 }
  0xab   : > { %v789_v56 = vmul.f32 1.442695, %v2174_v54  ;;  %v793_v57 = vmul.f32 1.442695, %v2177_v55 }
  0xac   : > { %v768_v58 = vpop.xlane.xlu0 %767  ;;  %v772_v59 = vpop.xlane.xlu1 %771 }
  0xad   : > { %1800 = vpow2.f32 %v789_v56  ;;  %v2182_v60 = vsub.f32 %v2072_v2, %v768_v58  ;;  %v2185_v61 = vsub.f32 %v2074_v3, %v772_v59  ;;  %v1716_v56 = vpack.c.bf16 %v888_v21, %v887_v19 }
  0xae   : > { %1802 = vpow2.f32 %v793_v57  ;;  %v697_v57 = vsel %vm684_vm0, %v670_v13, 0.0  ;;  %v694_v58 = vsel %vm684_vm0, %v669_v16, 0.0  ;;  %v643_v59 = vmul.f32 9.0, %v627_v53  ;;  %v631_v13 = vld [vmem:[%s2099_s25 + $0x68] sm:$0xff] }
  0xaf   : > { %v791_v62 = vmul.f32 1.442695, %v2182_v60  ;;  %v795_v63 = vmul.f32 1.442695, %v2185_v61  ;;  %1717 = vmatprep.subr.bf16.mxu0 %v1716_v56  ;;  %1733 = vmatprep.subr.bf16.mxu1 %v1716_v56  ;;  %v647_v22 = vmul.f32 9.0, %v631_v13  ;;  %v648_v21 = vmul.f32 9.0, %v632_v15 }
  0xb0   : > { %v774_v0 = vpop.xlane.xlu0 %773  ;;  %v776_v1 = vpop.xlane.xlu1 %775  ;;  %1719 = vmatpush3.bf16.msra.mxu0 %v1716_v56  ;;  %1741 = vmatpush3.bf16.msra.mxu1 %v1716_v56 }
  0xb1   : > { %1804 = vpow2.f32 %v791_v62  ;;  %v2190_v9 = vsub.f32 %v2078_v4, %v774_v0  ;;  %v2193_v12 = vsub.f32 %v2080_v5, %v776_v1  ;;  %v614_v62 = vld [vmem:[%s2094_s16 + $0x60] sm:$0xff]  ;;  %v660_v1 = vsub.f32 %v612_v18, %v644_v33 }
  0xb2   : > { %1806 = vpow2.f32 %v795_v63  ;;  %v2270_v63 = vld [vmem:[%s2094_s16 + $0x68] sm:$0xff]  ;;  %v630_v0 = vld [vmem:[%s2099_s25 + $0x60] sm:$0xff]  ;;  %v889_v32 = vmul.f32 0.5, %v614_v62 }
  0xb3   : > { %v797_v2 = vmul.f32 1.442695, %v2190_v9  ;;  %v799_v3 = vmul.f32 1.442695, %v2193_v12  ;;  %v890_v34 = vmul.f32 0.5, %v2270_v63  ;;  %v663_v28 = vsub.f32 %v2270_v63, %v647_v22 }
  0xb4   : > { %v778_v17 = vpop.xlane.xlu0 %777  ;;  %v780_v20 = vpop.xlane.xlu1 %779  ;;  %v676_v40 = vand.u32 2147483647, %v660_v1 }
  0xb5   : > { %1808 = vpow2.f32 %v797_v2  ;;  %v2198_v24 = vsub.f32 %v2084_v6, %v778_v17  ;;  %v2201_v25 = vsub.f32 %v2086_v7, %v780_v20  ;;  %v1720_v2 = vpack.c.bf16 %v890_v34, %v889_v32 }
  0xb6   : > { %1810 = vpow2.f32 %v799_v3  ;;  %v673_v3 = vand.u32 2147483647, %v657_v48  ;;  %v659_v17 = vsub.f32 %v2229_v42, %v643_v59  ;;  %v646_v20 = vmul.f32 9.0, %v630_v0  ;;  %v1246_v42 = vld [vmem:[%s2285_s28] sm:$0xff]  ;;  %v1256_v59 = vld [vmem:[%s2291_s18 + $0x10] sm:$0xff]  ;;  %v1257_v0 = vld [vmem:[%s2291_s18 + $0x18] sm:$0xff] }
  0xb7   : > { %v2203_v27 = vpop.eup %1800  ;;  %v801_v4 = vmul.f32 1.442695, %v2198_v24  ;;  %v803_v5 = vmul.f32 1.442695, %v2201_v25  ;;  %1721 = vmatprep.subr.bf16.mxu0 %v1720_v2  ;;  %1734 = vmatprep.subr.bf16.mxu1 %v1720_v2  ;;  %v709_v48 = vsel %vm684_vm0, %v674_v41, 0.0  ;;  %v1262_v16 = vsub.f32 %v1246_v42, %v1254_v43 }
  0xb8   : > { %805 = vadd.xlane.f32.xlu0 %v2203_v27  ;;  %v2208_v30 = vpop.eup %1802  ;;  %1723 = vmatpush3.bf16.msra.mxu0 %v1720_v2  ;;  %v706_v8 = vsel %vm684_vm0, %v673_v3, 0.0  ;;  %v662_v47 = vsub.f32 %v614_v62, %v646_v20  ;;  %v1249_v62 = vld [vmem:[%s2285_s28 + $0x18] sm:$0xff]  ;;  %v679_v63 = vand.u32 2147483647, %v663_v28 }
  0xb9   : > { %1812 = vpow2.f32 %v801_v4  ;;  %v645_v4 = vmul.f32 9.0, %v629_v29  ;;  %1742 = vmatpush3.bf16.msra.mxu1 %v1720_v2  ;;  %v1270_v23 = vand.u32 2147483647, %v1262_v16  ;;  %v633_v29 = vld [vmem:[%s2099_s25 + $0x78] sm:$0xff]  ;;  %v1265_v41 = vsub.f32 %v1249_v62, %v1257_v0  ;;  %s2332_s25 = scalar_lea.vmem %s2583_s4, %s2060_s24 }
  0xba   : > { %1814 = vpow2.f32 %v803_v5  ;;  %v616_v5 = vld [vmem:[%s2094_s16 + $0x70] sm:$0xff]  ;;  %v678_v53 = vand.u32 2147483647, %v662_v47  ;;  %v649_v1 = vmul.f32 9.0, %v633_v29  ;;  %v724_v2 = vsel %vm684_vm0, %v679_v63, 0.0  ;;  %v2339_v47 = vld [vmem:[%s2332_s25 + $0x8] sm:$0xff] }
  0xbb   : > { %v2210_v31 = vpop.eup %1804  ;;  %v891_v44 = vmul.f32 0.5, %v616_v5  ;;  %v661_v49 = vsub.f32 %v2256_v52, %v645_v4  ;;  %v1279_v32 = vsel %vm1278_vm1, %v1270_v23, 0.0  ;;  %v1273_v20 = vand.u32 2147483647, %v1265_v41  ;;  %v2349_v13 = vld [vmem:[%s2332_s25 + $0x20] sm:$0xff]  ;;  %v2358_v22 = vld [vmem:[%s2332_s25 + $0x38] sm:$0xff] }
  0xbc   : > { %809 = vadd.xlane.f32.xlu0 %v2208_v30  ;;  %807 = vadd.xlane.f32.xlu1 %v2210_v31  ;;  %v2214_v6 = vpop.eup %1806  ;;  %v721_v33 = vsel %vm684_vm0, %v678_v53, 0.0  ;;  %v665_v4 = vsub.f32 %v2295_v36, %v649_v1  ;;  %v2335_v36 = vld [vmem:[%s2332_s25] sm:$0xff]  ;;  %v1120_v16 = vmax.f32 %v2349_v13, 1e-30  ;;  %v2368_v41 = vld [vmem:[%s2332_s25 + $0x30] sm:$0xff]  ;;  %vm1109_vm3 = vcmp.gt.f32.partialorder %v2339_v47, 0.0 }
  0xbd   : > { %v1724_v45 = vpack.c.bf16 %v892_v46, %v891_v44  ;;  %v677_v19 = vand.u32 2147483647, %v661_v49  ;;  %v1258_v44 = vld [vmem:[%s2291_s18 + $0x20] sm:$0xff]  ;;  %v2342_v49 = vld [vmem:[%s2332_s25 + $0x10] sm:$0xff]  ;;  %vm1108_vm2 = vcmp.gt.f32.partialorder %v2335_v36, 0.0  ;;  %vm1112_vm6 = vcmp.gt.f32.partialorder %v2349_v13, 0.0 }
  0xbe   : > { %v1118_v15 = vmax.f32 %v2342_v49, 1e-30  ;;  %vm1110_vm4 = vcmp.gt.f32.partialorder %v2342_v49, 0.0  ;;  %vm1115_vm7 = vcmp.gt.f32.partialorder %v2358_v22, 0.0  ;;  %vm1114_vm9 = vcmp.gt.f32.partialorder %v2368_v41, 0.0 }
  0xbf   : > { %v2216_v7 = vpop.eup %1808  ;;  %1725 = vmatprep.subr.bf16.mxu0 %v1724_v45  ;;  %1735 = vmatprep.subr.bf16.mxu1 %v1724_v45  ;;  %v718_v56 = vsel %vm684_vm0, %v677_v19, 0.0  ;;  %v1123_v19 = vmax.f32 %v2358_v22, 1e-30 }
  0xc0   : > { %811 = vadd.xlane.f32.xlu1 %v2214_v6  ;;  %813 = vadd.xlane.f32.xlu0 %v2216_v7  ;;  %v2220_v35 = vpop.eup %1810 }
  0xc1   : > { %1727 = vmatpush3.bf16.msra.mxu0 %v1724_v45  ;;  %1743 = vmatpush3.bf16.msra.mxu1 %v1724_v45 }
  0xc3   : > { %v2225_v38 = vpop.eup %1812 }
  0xc4   : > { %815 = vadd.xlane.f32.xlu1 %v2220_v35  ;;  %817 = vadd.xlane.f32.xlu0 %v2225_v38  ;;  %v2237_v10 = vpop.eup %1814 }
  0xc8   : > { %819 = vadd.xlane.f32.xlu1 %v2237_v10  ;;  %686 = vadd.xlane.f32.xlu0 %v685_v14  ;;  %v675_v14 = vand.u32 2147483647, %v659_v17 }
  0xca   : > { %v712_v52 = vsel %vm684_vm0, %v675_v14, 0.0  ;;  %v1116_v14 = vmax.f32 %v2335_v36, 1e-30 }
  0xcc   : > { %692 = vadd.xlane.f32.xlu0 %v691_v11  ;;  %689 = vadd.xlane.f32.xlu1 %v688_v51  ;;  %v1255_v11 = vld [vmem:[%s2291_s18 + $0x8] sm:$0xff]  ;;  %v715_v51 = vsel %vm684_vm0, %v676_v40, 0.0  ;;  %v681_v40 = vand.u32 2147483647, %v665_v4  ;;  %1816 = vlog2.f32 %v1116_v14 }
  0xcd   : > { %v1263_v18 = vsub.f32 %v1247_v50, %v1255_v11  ;;  %v2345_v50 = vld [vmem:[%s2332_s25 + $0x18] sm:$0xff]  ;;  %v1117_v11 = vmax.f32 %v2339_v47, 1e-30 }
  0xce   : > { %v730_v43 = vsel %vm684_vm0, %v681_v40, 0.0  ;;  %vm1111_vm5 = vcmp.gt.f32.partialorder %v2345_v50, 0.0 }
  0xcf   : > { %v1271_v26 = vand.u32 2147483647, %v1263_v18  ;;  %v2355_v18 = vld [vmem:[%s2332_s25 + $0x28] sm:$0xff]  ;;  %1818 = vlog2.f32 %v1117_v11  ;;  %s2481_s25 = scalar_lea.vmem %s2582_s3, %s2060_s24 }
  0xd0   : > { %698 = vadd.xlane.f32.xlu0 %v697_v57  ;;  %695 = vadd.xlane.f32.xlu1 %v694_v58  ;;  %v664_v57 = vsub.f32 %v616_v5, %v648_v21  ;;  %v1248_v58 = vld [vmem:[%s2285_s28 + $0x10] sm:$0xff]  ;;  %v1250_v5 = vld [vmem:[%s2285_s28 + $0x20] sm:$0xff]  ;;  %1820 = vlog2.f32 %v1118_v15  ;;  %vm1113_vm8 = vcmp.gt.f32.partialorder %v2355_v18, 0.0 }
  0xd1   : > { %v1282_v34 = vsel %vm1278_vm1, %v1271_v26, 0.0  ;;  %v1266_v42 = vsub.f32 %v1250_v5, %v1258_v44 }
  0xd3   : > { %v1274_v45 = vand.u32 2147483647, %v1266_v42 }
  0xd4   : > { %704 = vadd.xlane.f32.xlu0 %v703_v37  ;;  %701 = vadd.xlane.f32.xlu1 %v700_v39  ;;  %v680_v37 = vand.u32 2147483647, %v664_v57  ;;  %v1264_v39 = vsub.f32 %v1248_v58, %v1256_v59 }
  0xd6   : > { %v727_v3 = vsel %vm684_vm0, %v680_v37, 0.0  ;;  %v1272_v17 = vand.u32 2147483647, %v1264_v39  ;;  %v1817_v21 = vpop.eup %1816 }
  0xd8   : > { %710 = vadd.xlane.f32.xlu0 %v709_v48  ;;  %707 = vadd.xlane.f32.xlu1 %v706_v8  ;;  %v1285_v46 = vsel %vm1278_vm1, %v1272_v17, 0.0  ;;  %v1288_v48 = vsel %vm1278_vm1, %v1273_v20, 0.0  ;;  %v1291_v8 = vsel %vm1278_vm1, %v1274_v45, 0.0 }
  0xd9   : > { %v1819_v28 = vpop.eup %1818 }
  0xda   : > { %v1127_v39 = vmul.f32 0.6931472, %v1819_v28 }
  0xdc   : > { %716 = vadd.xlane.f32.xlu0 %v715_v51  ;;  %713 = vadd.xlane.f32.xlu1 %v712_v52  ;;  %v1119_v51 = vmax.f32 %v2345_v50, 1e-30  ;;  %v1121_v52 = vmax.f32 %v2355_v18, 1e-30  ;;  %v1141_v40 = vmul.f32 %v1127_v39, %v2339_v47 }
  0xde   : > { %1822 = vlog2.f32 %v1119_v51 }
  0xdf   : > { %1824 = vlog2.f32 %v1120_v16 }
  0xe0   : > { %722 = vadd.xlane.f32.xlu0 %v721_v33  ;;  %719 = vadd.xlane.f32.xlu1 %v718_v56  ;;  %v1125_v33 = vmul.f32 0.6931472, %v1817_v21  ;;  %v1821_v56 = vpop.eup %1820 }
  0xe2   : > { %v1140_v29 = vmul.f32 %v1125_v33, %v2335_v36 }
  0xe4   : > { %1280 = vadd.xlane.f32.xlu0 %v1279_v32  ;;  %1283 = vadd.xlane.f32.xlu1 %v1282_v34  ;;  %v1148_v5 = vsel %vm1108_vm2, %v1140_v29, 0.0 }
  0xe8   : > { %725 = vadd.xlane.f32.xlu0 %v724_v2  ;;  %728 = vadd.xlane.f32.xlu1 %v727_v3  ;;  %v1823_v59 = vpop.eup %1822  ;;  %v1129_v3 = vmul.f32 0.6931472, %v1821_v56 }
  0xe9   : > { %v2362_v62 = vpop.eup %1824 }
  0xec   : > { %1286 = vadd.xlane.f32.xlu0 %v1285_v46  ;;  %1289 = vadd.xlane.f32.xlu1 %v1288_v48 }
  0xf0   : > { %731 = vadd.xlane.f32.xlu0 %v730_v43 }
  0xf4   : > { %1292 = vadd.xlane.f32.xlu0 %v1291_v8 }
 0x145   : > { %v806_v53 = vpop.xlane.xlu0 %805 }
 0x146   : > { %1826 = vrcp.f32 %v806_v53 }
 0x147   : > { %1828 = vlog2.f32 %v806_v53 }
 0x148   : > { %1830 = vlog2.f32 %v1121_v52 }
 0x149   : > { %v808_v23 = vpop.xlane.xlu1 %807  ;;  %v810_v26 = vpop.xlane.xlu0 %809  ;;  %1832 = vlog2.f32 %v1123_v19  ;;  %v1149_v19 = vsel %vm1109_vm3, %v1141_v40, 0.0 }
 0x14a   : > { %1834 = vrcp.f32 %v808_v23 }
 0x14b   : > { %1836 = vlog2.f32 %v808_v23 }
 0x14c   : > { %1838 = vrcp.f32 %v810_v26 }
 0x14d   : > { %1840 = vlog2.f32 %v810_v26  ;;  %v812_v57 = vpop.xlane.xlu1 %811  ;;  %v814_v58 = vpop.xlane.xlu0 %813 }
 0x14e   : > { %1842 = vrcp.f32 %v812_v57 }
 0x14f   : > { %1844 = vlog2.f32 %v812_v57 }
 0x150   : > { %v1827_v0 = vpop.eup %1826  ;;  %1846 = vrcp.f32 %v814_v58 }
 0x151   : > { %v1829_v32 = vpop.eup %1828  ;;  %1848 = vlog2.f32 %v814_v58  ;;  %v816_v34 = vpop.xlane.xlu1 %815  ;;  %v829_v37 = vmul.f32 %v1827_v0, %v2203_v27  ;;  %v1122_v27 = vmax.f32 %v2368_v41, 1e-30  ;;  %v1133_v58 = vmul.f32 0.6931472, %v2362_v62 }
 0x152   : > { %v818_v63 = vpop.xlane.xlu0 %817  ;;  %v2370_v1 = vpop.eup %1830  ;;  %v838_v2 = vmul.f32 0.6931472, %v1829_v32  ;;  %1850 = vrcp.f32 %v816_v34 }
 0x153   : > { %v1833_v17 = vpop.eup %1832  ;;  %1852 = vlog2.f32 %v816_v34  ;;  %1684 = vmatprep.mubr.f32.mxu0 %v829_v37 }
 0x154   : > { %v1835_v20 = vpop.eup %1834  ;;  %1854 = vrcp.f32 %v818_v63  ;;  %v853_v4 = vsub.f32 %v2174_v54, %v838_v2  ;;  %v1142_v54 = vmul.f32 %v1129_v3, %v2342_v49  ;;  %v1139_v2 = vmul.f32 0.6931472, %v1833_v17 }
 0x155   : > { %v1837_v44 = vpop.eup %1836  ;;  %1856 = vlog2.f32 %v818_v63  ;;  %v820_v46 = vpop.xlane.xlu1 %819  ;;  %v830_v48 = vmul.f32 %v1835_v20, %v2210_v31  ;;  %v1131_v31 = vmul.f32 0.6931472, %v1823_v59 }
 0x156   : > { %v2377_v42 = vpop.xlane.xlu0 %686  ;;  %v1839_v43 = vpop.eup %1838  ;;  %v840_v45 = vmul.f32 0.6931472, %v1837_v44  ;;  %1858 = vrcp.f32 %v820_v46  ;;  %v1156_v8 = vmul.f32 %v2335_v36, %v853_v4  ;;  %v1150_v33 = vsel %vm1110_vm4, %v1142_v54, 0.0 }
 0x157   : > { %v1841_v14 = vpop.eup %1840  ;;  %1860 = vlog2.f32 %v820_v46  ;;  %1685 = vmatmul.mubr.f32.vlgmr.msra.gmra.mrb[0].mxu0 %v830_v48  ;;  %v831_v11 = vmul.f32 %v1839_v43, %v2208_v30  ;;  %v1143_v57 = vmul.f32 %v1131_v31, %v2345_v50  ;;  %v1201_v29 = vmul.f32 %v853_v4, %v829_v37 }
 0x158   : > { %v1843_v15 = vpop.eup %1842  ;;  %v842_v51 = vmul.f32 0.6931472, %v1841_v14  ;;  %v1164_v16 = vsub.f32 %v1148_v5, %v1156_v8  ;;  %v854_v52 = vsub.f32 %v2182_v60, %v840_v45  ;;  %1862 = vlog2.f32 %v1122_v27 }
 0x159   : > { %v1845_v53 = vpop.eup %1844  ;;  %1687 = vmatprep.mubr.f32.mxu0 %v831_v11  ;;  %v2385_v36 = vmul.f32 %v1843_v15, %v2214_v6  ;;  %v2391_v30 = vpop.xlane.xlu1 %689  ;;  %v1144_v37 = vmul.f32 %v1133_v58, %v2349_v13  ;;  %v1209_v27 = vsub.f32 0.0, %v1201_v29  ;;  %v1147_v45 = vmul.f32 %v1139_v2, %v2358_v22 }
 0x15a   : > { %v2389_v21 = vpop.xlane.xlu0 %692  ;;  %v1847_v23 = vpop.eup %1846  ;;  %v844_v26 = vmul.f32 0.6931472, %v1845_v53  ;;  %1172 = vadd.xlane.f32.xlu1 %v1164_v16  ;;  %v1157_v28 = vmul.f32 %v2339_v47, %v854_v52  ;;  %v855_v60 = vsub.f32 %v2177_v55, %v842_v51  ;;  %v1202_v20 = vmul.f32 %v854_v52, %v830_v48 }
 0x15b   : > { %v1849_v56 = vpop.eup %1848  ;;  %1688 = vmatmul.mubr.f32.gmra.mrb[2].mxu0 %v2385_v36  ;;  %v2399_v6 = vmul.f32 %v1847_v23, %v2216_v7  ;;  %v1152_v31 = vsel %vm1112_vm6, %v1144_v37, 0.0  ;;  %v2433_v23 = vsel %vm1115_vm7, %v1147_v45, 0.0 }
 0x15c   : > { %v1851_v59 = vpop.eup %1850  ;;  %v846_v0 = vmul.f32 0.6931472, %v1849_v56  ;;  %v1165_v47 = vsub.f32 %v1149_v19, %v1157_v28  ;;  %v1158_v55 = vmul.f32 %v2342_v49, %v855_v60  ;;  %v856_v7 = vsub.f32 %v2185_v61, %v844_v26 }
 0x15d   : > { %v1853_v32 = vpop.eup %1852  ;;  %1690 = vmatprep.mubr.f32.mxu1 %v2399_v6  ;;  %v2407_v34 = vmul.f32 %v1851_v59, %v2220_v35  ;;  %v2412_v39 = vpop.xlane.xlu1 %695  ;;  %v1151_v35 = vsel %vm1111_vm5, %v1143_v57, 0.0  ;;  %v1203_v40 = vmul.f32 %v855_v60, %v831_v11 }
 0x15e   : > { %v2410_v63 = vpop.xlane.xlu0 %698  ;;  %v1855_v62 = vpop.eup %1854  ;;  %1174 = vadd.xlane.f32.xlu0 %v1165_v47  ;;  %v1166_v3 = vsub.f32 %v1150_v33, %v1158_v55  ;;  %v1159_v17 = vmul.f32 %v2345_v50, %v856_v7  ;;  %v857_v44 = vsub.f32 %v2190_v9, %v846_v0  ;;  %v848_v54 = vmul.f32 0.6931472, %v1853_v32 }
 0x15f   : > { %v1857_v5 = vpop.eup %1856  ;;  %1691 = vmatmul.mubr.f32.vlgmr.msra.gmra.mrb[0].mxu1 %v2407_v34  ;;  %v835_v49 = vmul.f32 %v1855_v62, %v2225_v38  ;;  %v1210_v50 = vsub.f32 0.0, %v1202_v20  ;;  %v1135_v9 = vmul.f32 0.6931472, %v2370_v1  ;;  %v1211_v16 = vsub.f32 0.0, %v1203_v40 }
 0x160   : > { %v1859_v61 = vpop.eup %1858  ;;  %v850_v4 = vmul.f32 0.6931472, %v1857_v5  ;;  %1176 = vadd.xlane.f32.xlu1 %v1166_v3  ;;  %v1167_v11 = vsub.f32 %v1151_v35, %v1159_v17  ;;  %v1160_v15 = vmul.f32 %v2349_v13, %v857_v44  ;;  %v1204_v1 = vmul.f32 %v856_v7, %v2385_v36 }
 0x161   : > { %v1861_v46 = vpop.eup %1860  ;;  %1693 = vmatprep.mubr.f32.mxu1 %v835_v49  ;;  %v836_v48 = vmul.f32 %v1859_v61, %v2237_v10  ;;  %v2425_v43 = vpop.xlane.xlu1 %701  ;;  %v1205_v33 = vmul.f32 %v857_v44, %v2399_v6 }
 0x162   : > { %v2423_v38 = vpop.xlane.xlu0 %704  ;;  %v1863_v8 = vpop.eup %1862  ;;  %v852_v14 = vmul.f32 0.6931472, %v1861_v46  ;;  %1217 = vadd.xlane.f32.xlu0 %v1209_v27  ;;  %v859_v10 = vsub.f32 %v2198_v24, %v850_v4  ;;  %v858_v24 = vsub.f32 %v2193_v12, %v848_v54  ;;  %v1168_v13 = vsub.f32 %v1152_v31, %v1160_v15 }
 0x163   : > { %1694 = vmatmul.mubr.f32.gmra.mrb[2].mxu1 %v836_v48  ;;  %v1137_v52 = vmul.f32 0.6931472, %v1863_v8  ;;  %v1212_v58 = vsub.f32 0.0, %v1204_v1  ;;  %v1213_v0 = vsub.f32 0.0, %v1205_v33 }
 0x164   : > { %1219 = vadd.xlane.f32.xlu1 %v1210_v50  ;;  %v860_v51 = vsub.f32 %v2201_v25, %v852_v14  ;;  %v2435_v26 = vmul.f32 %v859_v10, %v835_v49  ;;  %v1145_v25 = vmul.f32 %v1135_v9, %v2355_v18  ;;  %v1162_v47 = vmul.f32 %v2368_v41, %v859_v10 }
 0x165   : > { %v708_v19 = vpop.xlane.xlu1 %707  ;;  %v1146_v36 = vmul.f32 %v1137_v52, %v2368_v41  ;;  %v1206_v7 = vmul.f32 %v858_v24, %v2407_v34  ;;  %v733_v41 = vadd.f32 %v2391_v30, %v2377_v42  ;;  %v595_v9 = vlaneseq }
 0x166   : > { %v711_v53 = vpop.xlane.xlu0 %710  ;;  %1178 = vadd.xlane.f32.xlu0 %v1167_v11  ;;  %v2440_v28 = vmul.f32 %v2358_v22, %v860_v51  ;;  %v2442_v60 = vmul.f32 %v860_v51, %v836_v48  ;;  %v1161_v22 = vmul.f32 %v2355_v18, %v858_v24  ;;  %v1153_v59 = vsel %vm1113_vm8, %v1145_v25, 0.0 }
 0x167   : > { %v1154_v55 = vsel %vm1114_vm9, %v1146_v36, 0.0  ;;  %v1214_v20 = vsub.f32 0.0, %v1206_v7  ;;  %v734_v37 = vadd.f32 %v733_v41, %v2389_v21  ;;  %v1948_v10 = vmov 0.0  }
 0x168   : > { %1221 = vadd.xlane.f32.xlu1 %v1211_v16  ;;  %v1171_v56 = vsub.f32 %v2433_v23, %v2440_v28  ;;  %v1169_v32 = vsub.f32 %v1153_v59, %v1161_v22  ;;  %v1170_v2 = vsub.f32 %v1154_v55, %v1162_v47  ;;  %601 = vst [vmem:[#allocation2] sm:$0x1] %v1948_v10  ;;  %v1316_v16 = vld [vmem:[%s588_s15] sm:$0xf]  ;;  %v999_v47 = vld [vmem:[%s2481_s25 + $0x8] sm:$0xff] }
 0x169   : > { %v714_v12 = vpop.xlane.xlu1 %713  ;;  %v735_v61 = vadd.f32 %v734_v37, %v2412_v39  ;;  %v1318_v52 = vsel %vm1317_vm11, %v1316_v16, -inf  ;;  %v998_v55 = vld [vmem:[%s2481_s25] sm:$0xff] }
 0x16a   : > { %v717_v57 = vpop.xlane.xlu0 %716  ;;  %1180 = vadd.xlane.f32.xlu0 %v1168_v13 }
 0x16b   : > { %v736_v34 = vadd.f32 %v735_v61, %v2410_v63 }
 0x16c   : > { %1223 = vadd.xlane.f32.xlu1 %v1212_v58 }
 0x16d   : > { %v720_v29 = vpop.xlane.xlu1 %719  ;;  %v737_v4 = vadd.f32 %v736_v34, %v2425_v43 }
 0x16e   : > { %v723_v6 = vpop.xlane.xlu0 %722  ;;  %1225 = vadd.xlane.f32.xlu0 %v1213_v0 }
 0x16f   : > { %v738_v27 = vadd.f32 %v737_v4, %v2423_v38  ;;  %v2464_v38 = vand.u32 127, %v595_v9  ;;  %v682_v15 = vld [vmem:[#allocation2] sm:$0x1] }
 0x170   : > { %1182 = vadd.xlane.f32.xlu1 %v1169_v32 }
 0x171   : > { %v1284_v3 = vpop.xlane.xlu1 %1283  ;;  %v739_v17 = vadd.f32 %v738_v27, %v708_v19  ;;  %vm683_vm10 = vcmp.eq.s32.totalorder %v2464_v38, 5  ;;  %v1003_v27 = vld [vmem:[%s2481_s25 + $0x28] sm:$0xff]  ;;  %vm1362_vm7 = vcmp.eq.s32.totalorder %v2464_v38, 0  ;;  %vm1367_vm8 = vcmp.eq.s32.totalorder %v2464_v38, 2 }
 0x172   : > { %v1281_v62 = vpop.xlane.xlu0 %1280  ;;  %1184 = vadd.xlane.f32.xlu0 %v1170_v2  ;;  %vm1370_vm9 = vcmp.eq.s32.totalorder %v2464_v38, 3 }
 0x173   : > { %v1303_v18 = vadd.f32 %v1284_v3, %v1281_v62  ;;  %v740_v44 = vadd.f32 %v739_v17, %v711_v53  ;;  %v1319_v53 = vrot.slane %v1318_v52, 4  ;;  %v1001_v62 = vld [vmem:[%s2481_s25 + $0x18] sm:$0xff] }
 0x174   : > { %1227 = vadd.xlane.f32.xlu1 %v1214_v20  ;;  %v1000_v20 = vld [vmem:[%s2481_s25 + $0x10] sm:$0xff] }
 0x175   : > { %v741_v46 = vadd.f32 %v740_v44, %v714_v12  ;;  %v729_v54 = vpop.xlane.xlu1 %728  ;;  %v1320_v19 = vmax.f32 %v1318_v52, %v1319_v53 }
 0x176   : > { %v726_v5 = vpop.xlane.xlu0 %725 }
 0x177   : > { %v742_v48 = vadd.f32 %v741_v46, %v717_v57  ;;  %v1321_v1 = vrot.slane %v1320_v19, 2  ;;  %v1002_v46 = vld [vmem:[%s2481_s25 + $0x20] sm:$0xff] }
 0x179   : > { %v743_v40 = vadd.f32 %v742_v48, %v720_v29  ;;  %v1322_v24 = vmax.f32 %v1320_v19, %v1321_v1  ;;  %v1004_v1 = vld [vmem:[%s2481_s25 + $0x30] sm:$0xff] }
 0x17a   : > { %v1287_v49 = vpop.xlane.xlu0 %1286 }
 0x17b   : > { %v2454_v35 = vadd.f32 %v1303_v18, %v1287_v49  ;;  %v744_v45 = vadd.f32 %v743_v40, %v723_v6  ;;  %v1323_v25 = vrot.slane %v1322_v24, 1 }
 0x17d   : > { %v745_v8 = vadd.f32 %v744_v45, %v726_v5  ;;  %v1324_v13 = vmax.f32 %v1322_v24, %v1323_v25 }
 0x17e   : > { %v732_v42 = vpop.xlane.xlu0 %731 }
 0x17f   : > { %v746_v14 = vadd.f32 %v745_v8, %v729_v54  ;;  %v2473_v33 = vsub.f32 %v1316_v16, %v1324_v13  ;;  %v1251_v13 = vld [vmem:[%s2285_s28 + $0x28] sm:$0xff] }
 0x181   : > { %v747_v21 = vadd.f32 %v746_v14, %v732_v42  ;;  %v1326_v36 = vmul.f32 1.442695, %v2473_v33 }
 0x183   : > { %v748_v30 = vrot.slane %v747_v21, 4  ;;  %1864 = vpow2.f32 %v1326_v36  ;;  %v1340_v36 = vshrl.u32 %v595_v9, 7 }
 0x185   : > { %v749_v39 = vadd.f32 %v748_v30, %v747_v21 }
 0x187   : > { %v750_v50 = vrot.slane %v749_v39, 2 }
 0x189   : > { %v751_v63 = vadd.f32 %v750_v50, %v749_v39 }
 0x18b   : > { %v752_v43 = vrot.slane %v751_v63, 1 }
 0x18d   : > { %v753_v11 = vadd.f32 %v752_v43, %v751_v63  ;;  %v1865_v57 = vpop.eup %1864  ;;  %v1005_v63 = vld [vmem:[%s2481_s25 + $0x38] sm:$0xff]  ;;  %s1384_s25 = scalar_lea.sflag [#allocation4], %s520_s23 }
 0x18e   : > { %v1328_v12 = vsel %vm1317_vm11, %v1865_v57, 0.0 }
 0x18f   : > { %v754_v31 = vsel %vm683_vm10, %v753_v11, 0.0  ;;  %v1329_v58 = vrot.slane %v1328_v12, 4  ;;  %vm1373_vm10 = vcmp.eq.s32.totalorder %v2464_v38, 4 }
 0x190   : > { %v755_v51 = vadd.f32 %v754_v31, %v682_v15 }
 0x191   : > { %v1330_v22 = vadd.f32 %v1329_v58, %v1328_v12 }
 0x192   : > { %756 = vst [vmem:[#allocation2] sm:$0x1] %v755_v51 }
 0x193   : > { %v1331_v59 = vrot.slane %v1330_v22, 2 }
 0x195   : > { %v1332_v0 = vadd.f32 %v1331_v59, %v1330_v22 }
 0x197   : > { %v1333_v6 = vrot.slane %v1332_v0, 1 }
 0x199   : > { %v1334_v18 = vadd.f32 %v1333_v6, %v1332_v0 }
 0x19b   : > { %1866 = vlog2.f32 %v1334_v18 }
 0x1a5   : > { %v1867_v6 = vpop.eup %1866 }
 0x22a   : > { %v1686_v29 = vpop.f32.mrb[0].mxu0 }
 0x22b   : > { %v1007_v32 = vsub.f32 %v1686_v29, %v999_v47  ;;  %v959_v7 = vpop.f32.mrb[1].mxu0 }
 0x22c   : > { %v1006_v2 = vsub.f32 %v959_v7, %v998_v55  ;;  %v1259_v55 = vld [vmem:[%s2291_s18 + $0x28] sm:$0xff] }
 0x22d   : > { %v1015_v3 = vand.u32 2147483647, %v1007_v32  ;;  %v1267_v18 = vsub.f32 %v1251_v13, %v1259_v55 }
 0x22e   : > { %v1014_v5 = vand.u32 2147483647, %v1006_v2  ;;  %v1689_v49 = vpop.f32.mrb[2].mxu0 }
 0x22f   : > { %v1023_v41 = vmul.f32 %v1015_v3, %v1015_v3  ;;  %v1009_v37 = vsub.f32 %v1689_v49, %v1001_v62  ;;  %v969_v61 = vpop.f32.mrb[3].mxu0  ;;  %v1609_v17 = vadd.f32 -0.005, %v1015_v3  ;;  %vm1047_vm12 = vcmp.gt.f32.partialorder %v1015_v3, 0.01 }
 0x230   : > { %v1022_v34 = vmul.f32 %v1014_v5, %v1014_v5  ;;  %v1008_v4 = vsub.f32 %v969_v61, %v1000_v20  ;;  %v1608_v54 = vadd.f32 -0.005, %v1014_v5  ;;  %vm1046_vm13 = vcmp.gt.f32.partialorder %v1014_v5, 0.01  ;;  %v1616_v5 = vld [vmem:[%s594_s27] ss:$0 sm:$0xff] }
 0x231   : > { %v1017_v44 = vand.u32 2147483647, %v1009_v37  ;;  %v1031_v48 = vmul.f32 50.0, %v1023_v41  ;;  %v1336_v61 = vmul.f32 0.6931472, %v1867_v6  ;;  %vm1345_vm4 = vcmp.eq.s32.totalorder %v1340_v36, %v1616_v5 }
 0x232   : > { %v1016_v40 = vand.u32 2147483647, %v1008_v4  ;;  %v1692_v45 = vpop.f32.mrb[0].mxu1  ;;  %v1030_v8 = vmul.f32 50.0, %v1022_v34  ;;  %v1252_v34 = vld [vmem:[%s2285_s28 + $0x30] sm:$0xff] }
 0x233   : > { %v1011_v14 = vsub.f32 %v1692_v45, %v1003_v27  ;;  %v979_v42 = vpop.f32.mrb[1].mxu1  ;;  %v1055_v21 = vsel %vm1047_vm12, %v1609_v17, %v1031_v48  ;;  %v1025_v30 = vmul.f32 %v1017_v44, %v1017_v44  ;;  %v1611_v9 = vadd.f32 -0.005, %v1017_v44  ;;  %v1260_v4 = vld [vmem:[%s2291_s18 + $0x30] sm:$0xff] }
 0x234   : > { %v1010_v39 = vsub.f32 %v979_v42, %v1002_v46  ;;  %v1066_v50 = vsel %vm684_vm0, %v1055_v21, 0.0  ;;  %v1024_v43 = vmul.f32 %v1016_v40, %v1016_v40  ;;  %v1054_v31 = vsel %vm1046_vm13, %v1608_v54, %v1030_v8 }
 0x235   : > { %v1019_v11 = vand.u32 2147483647, %v1011_v14  ;;  %1067 = vadd.xlane.f32.xlu0 %v1066_v50  ;;  %v1063_v51 = vsel %vm684_vm0, %v1054_v31, 0.0  ;;  %v1033_v25 = vmul.f32 50.0, %v1025_v30  ;;  %v1610_v29 = vadd.f32 -0.005, %v1016_v40 }
 0x236   : > { %v1018_v15 = vand.u32 2147483647, %v1010_v39  ;;  %v1695_v16 = vpop.f32.mrb[2].mxu1  ;;  %1064 = vadd.xlane.f32.xlu1 %v1063_v51  ;;  %v1032_v22 = vmul.f32 50.0, %v1024_v43  ;;  %vm1048_vm2 = vcmp.gt.f32.partialorder %v1016_v40, 0.01  ;;  %v1268_v45 = vsub.f32 %v1252_v34, %v1260_v4 }
 0x237   : > { %v1027_v52 = vmul.f32 %v1019_v11, %v1019_v11  ;;  %v1013_v53 = vsub.f32 %v1695_v16, %v1005_v63  ;;  %v989_v19 = vpop.f32.mrb[3].mxu1  ;;  %v1613_v57 = vadd.f32 -0.005, %v1019_v11  ;;  %vm1051_vm14 = vcmp.gt.f32.partialorder %v1019_v11, 0.01  ;;  %v1253_v43 = vld [vmem:[%s2285_s28 + $0x38] sm:$0xff]  ;;  %v1290_v16 = vpop.xlane.xlu1 %1289 }
 0x238   : > { %v1026_v24 = vmul.f32 %v1018_v15, %v1018_v15  ;;  %v1612_v59 = vadd.f32 -0.005, %v1018_v15  ;;  %v1012_v0 = vsub.f32 %v989_v19, %v1004_v1  ;;  %vm1050_vm15 = vcmp.gt.f32.partialorder %v1018_v15, 0.01  ;;  %v1261_v11 = vld [vmem:[%s2291_s18 + $0x38] sm:$0xff]  ;;  %s1618_s28 = sshll.u32 %s1938_s12, 4 }
 0x239   : > { %v1021_v12 = vand.u32 2147483647, %v1013_v53  ;;  %v1035_v58 = vmul.f32 50.0, %v1027_v52  ;;  %v1056_v20 = vsel %vm1048_vm2, %v1610_v29, %v1032_v22  ;;  %vm1049_vm3 = vcmp.gt.f32.partialorder %v1017_v44, 0.01  ;;  %v1293_v52 = vpop.xlane.xlu0 %1292  ;;  %s521_s18 = scalar_lea.vmem [#allocation3], %s520_s23  ;;  %s2532_s20 = scalar_lea.hbm %s2588_s9, %s1618_s28 }
 0x23a   : > { %v1034_v47 = vmul.f32 50.0, %v1026_v24  ;;  %v1020_v49 = vand.u32 2147483647, %v1012_v0  ;;  %v1057_v41 = vsel %vm1049_vm3, %v1611_v9, %v1033_v25  ;;  %v1069_v17 = vsel %vm684_vm0, %v1056_v20, 0.0  ;;  %s1396_s29 = sshll.u32 %s521_s18, 4  ;;  %s1949_s12 = smov [#allocation3]   ;;  %s2534_s29 = int_to_ptr.vmem [resolvable:$true] %s1396_s29 }
 0x23b   : > { %v1029_v32 = vmul.f32 %v1021_v12, %v1021_v12  ;;  %v1059_v7 = vsel %vm1051_vm14, %v1613_v57, %v1035_v58  ;;  %v1615_v27 = vadd.f32 -0.005, %v1021_v12  ;;  %v1072_v46 = vsel %vm684_vm0, %v1057_v41, 0.0  ;;  %v1173_v53 = vpop.xlane.xlu1 %1172  ;;  %s1868_s24 = scalar_lea.vmem %s2534_s29, 16  ;;  %s1872_s26 = sshll.u32 %s1949_s12, 4  ;;  %s1873_s26 = int_to_ptr.vmem [resolvable:$false] %s1872_s26 }
 0x23c   : > { %v1078_v2 = vsel %vm684_vm0, %v1059_v7, 0.0  ;;  %v1058_v62 = vsel %vm1050_vm15, %v1612_v59, %v1034_v47  ;;  %vm1053_vm5 = vcmp.gt.f32.partialorder %v1021_v12, 0.01  ;;  %v1275_v48 = vand.u32 2147483647, %v1267_v18  ;;  %p1869_p12 = scmp.ne.s32.totalorder %s2534_s29, %s1868_s24  ;;  %s1874_s27 = scalar_lea.vmem %s1873_s26, 32 }
 0x23d   : > { %1079 = vadd.xlane.f32.xlu0 %v1078_v2  ;;  %v1075_v3 = vsel %vm684_vm0, %v1058_v62, 0.0  ;;  %v1037_v37 = vmul.f32 50.0, %v1029_v32  ;;  %v1028_v44 = vmul.f32 %v1020_v49, %v1020_v49  ;;  %v1337_v8 = vsub.f32 %v2473_v33, %v1336_v61  ;;  %v1175_v19 = vpop.xlane.xlu0 %1174  ;;  %p1875_p1 = scmp.lt.s32.totalorder %s2534_s29, %s1873_s26  ;;  %p1876_p2 = scmp.lt.s32.totalorder %s1874_s27, %s1868_s24 }
 0x23e   : > { %1076 = vadd.xlane.f32.xlu1 %v1075_v3  ;;  %v1617_v54 = vsel %vm1345_vm4, 1.0, %v1948_v10  ;;  %v1294_v42 = vsel %vm1278_vm1, %v1275_v48, 0.0  ;;  %v1276_v21 = vand.u32 2147483647, %v1268_v45  ;;  %v1614_v50 = vadd.f32 -0.005, %v1020_v49  ;;  %p1870_p13 = pnand %p1869_p12, %p2040_p4 }
 0x23f   : > { %v1061_v40 = vsel %vm1053_vm5, %v1615_v27, %v1037_v37  ;;  %v1036_v30 = vmul.f32 50.0, %v1028_v44  ;;  %v1348_v39 = vmul.f32 %v1617_v54, %v1337_v8  ;;  %v1215_v63 = vsub.f32 0.0, %v2435_v26  ;;  %v1177_v1 = vpop.xlane.xlu1 %1176  ;;  %p1877_p3 = por %p1876_p2, %p1875_p1 }
 0x240   : > { %v1084_v14 = vsel %vm684_vm0, %v1061_v40, 0.0  ;;  %vm1052_vm6 = vcmp.gt.f32.partialorder %v1020_v49, 0.01  ;;  %v1297_v10 = vsel %vm1278_vm1, %v1276_v21, 0.0  ;;  %v1216_v51 = vsub.f32 0.0, %v2442_v60  ;;  %p1871_p0 = pneg %p1870_p13 }
 0x241   : > { %1070 = vadd.xlane.f32.xlu0 %v1069_v17  ;;  %v1060_v23 = vsel %vm1052_vm6, %v1614_v50, %v1036_v30  ;;  %v1349_v28 = vsub.f32 0.0, %v1348_v39  ;;  %v1218_v24 = vpop.xlane.xlu0 %1217  ;;  %v1188_v0 = vadd.f32 %v1175_v19, %v1173_v53  ;;  %v1305_v45 = vadd.f32 %v2454_v35, %v1290_v16 }
 0x242   : > { %1073 = vadd.xlane.f32.xlu1 %v1072_v46  ;;  %v1081_v33 = vsel %vm684_vm0, %v1060_v23, 0.0  ;;  %vm1353_vm0 = vcmask 1043456   ;;  %p1878_p5 = pnand %p1877_p3, %p1871_p0 }
 0x243   : > { %v1350_v31 = vsel %vm1317_vm11, %v1349_v28, 0.0  ;;  %v1220_v25 = vpop.xlane.xlu1 %1219  ;;  %v1189_v6 = vadd.f32 %v1188_v0, %v1177_v1  ;;  %v1306_v50 = vadd.f32 %v1305_v45, %v1293_v52 }
 0x244   : > { %v1233_v34 = vadd.f32 %v1220_v25, %v1218_v24 }
 0x245   : > { %1186 = vadd.xlane.f32.xlu0 %v1171_v56  ;;  %v1269_v56 = vsub.f32 %v1253_v43, %v1261_v11  ;;  %v1179_v13 = vpop.xlane.xlu0 %1178 }
 0x246   : > { %1085 = vadd.xlane.f32.xlu1 %v1084_v14  ;;  %v1190_v32 = vadd.f32 %v1189_v6, %v1179_v13 }
 0x247   : > { %v1277_v15 = vand.u32 2147483647, %v1269_v56  ;;  %v1222_v36 = vpop.xlane.xlu1 %1221 }
 0x248   : > { %v1234_v27 = vadd.f32 %v1233_v34, %v1222_v36  ;;  %v1361_v34 = vld [vmem:[#allocation2] sm:$0x1] }
 0x249   : > { %1295 = vadd.xlane.f32.xlu0 %v1294_v42  ;;  %v1300_v26 = vsel %vm1278_vm1, %v1277_v15, 0.0  ;;  %v1181_v57 = vpop.xlane.xlu0 %1180  ;;  %vm1364_vm1 = vcmp.eq.s32.totalorder %v2464_v38, 1 }
 0x24a   : > { %1229 = vadd.xlane.f32.xlu1 %v1215_v63  ;;  %v1191_v9 = vadd.f32 %v1190_v32, %v1181_v57 }
 0x24b   : > { %v1224_v12 = vpop.xlane.xlu1 %1223 }
 0x24c   : > { %v1235_v40 = vadd.f32 %v1234_v27, %v1224_v12 }
 0x24d   : > { %1298 = vadd.xlane.f32.xlu0 %v1297_v10  ;;  %v1226_v58 = vpop.xlane.xlu0 %1225 }
 0x24e   : > { %1082 = vadd.xlane.f32.xlu1 %v1081_v33  ;;  %v1236_v8 = vadd.f32 %v1235_v40, %v1226_v58 }
 0x24f   : > { %v1183_v22 = vpop.xlane.xlu1 %1182 }
 0x250   : > { %v1192_v3 = vadd.f32 %v1191_v9, %v1183_v22 }
 0x251   : > { %1351 = vadd.xlane.f32.xlu0 %v1350_v31  ;;  %v1185_v59 = vpop.xlane.xlu0 %1184 }
 0x252   : > { %1231 = vadd.xlane.f32.xlu1 %v1216_v51  ;;  %v1193_v5 = vadd.f32 %v1192_v3, %v1185_v59 }
 0x253   : > { %v1228_v60 = vpop.xlane.xlu1 %1227 }
 0x254   : > { %v1237_v30 = vadd.f32 %v1236_v8, %v1228_v60 }
 0x256   : > { %1301 = vadd.xlane.f32.xlu1 %v1300_v26 }
 0x2c2   : > { %v1068_v47 = vpop.xlane.xlu0 %1067 }
 0x2c3   : > { %v1065_v55 = vpop.xlane.xlu1 %1064 }
 0x2c4   : > { %v1087_v2 = vadd.f32 %v1068_v47, %v1065_v55 }
 0x2ca   : > { %v1080_v29 = vpop.xlane.xlu0 %1079 }
 0x2cb   : > { %v1077_v7 = vpop.xlane.xlu1 %1076 }
 0x2ce   : > { %v1071_v62 = vpop.xlane.xlu0 %1070 }
 0x2cf   : > { %v1088_v20 = vadd.f32 %v1087_v2, %v1071_v62  ;;  %v1074_v18 = vpop.xlane.xlu1 %1073 }
 0x2d1   : > { %v1089_v49 = vadd.f32 %v1088_v20, %v1074_v18 }
 0x2d2   : > { %v1187_v41 = vpop.xlane.xlu0 %1186 }
 0x2d3   : > { %v1194_v37 = vadd.f32 %v1193_v5, %v1187_v41  ;;  %v1086_v61 = vpop.xlane.xlu1 %1085  ;;  %v1090_v17 = vadd.f32 %v1089_v49, %v1077_v7 }
 0x2d5   : > { %v1195_v4 = vrot.slane %v1194_v37, 4  ;;  %v1091_v14 = vadd.f32 %v1090_v17, %v1080_v29 }
 0x2d6   : > { %v1296_v46 = vpop.xlane.xlu0 %1295 }
 0x2d7   : > { %v1196_v48 = vadd.f32 %v1195_v4, %v1194_v37  ;;  %v1230_v44 = vpop.xlane.xlu1 %1229  ;;  %v1307_v56 = vadd.f32 %v1306_v50, %v1296_v46 }
 0x2d8   : > { %v1238_v63 = vadd.f32 %v1237_v30, %v1230_v44 }
 0x2d9   : > { %v1197_v42 = vrot.slane %v1196_v48, 2 }
 0x2da   : > { %v1299_v54 = vpop.xlane.xlu0 %1298 }
 0x2db   : > { %v1083_v21 = vpop.xlane.xlu1 %1082  ;;  %v1198_v10 = vadd.f32 %v1197_v42, %v1196_v48  ;;  %v1308_v35 = vadd.f32 %v1307_v56, %v1299_v54 }
 0x2dc   : > { %v1092_v39 = vadd.f32 %v1091_v14, %v1083_v21 }
 0x2dd   : > { %v1199_v53 = vrot.slane %v1198_v10, 1 }
 0x2de   : > { %v1093_v43 = vadd.f32 %v1092_v39, %v1086_v61  ;;  %v1352_v11 = vpop.xlane.xlu0 %1351 }
 0x2df   : > { %v1232_v23 = vpop.xlane.xlu1 %1231  ;;  %v1354_v28 = vsel %vm1353_vm0, %v1352_v11, 0.0  ;;  %v1200_v12 = vadd.f32 %v1199_v53, %v1198_v10 }
 0x2e0   : > { %v1094_v33 = vrot.slane %v1093_v43, 4  ;;  %v1239_v31 = vadd.f32 %v1238_v63, %v1232_v23  ;;  %v1355_v15 = vrot.slane %v1354_v28, 4 }
 0x2e1   : > { %v1365_v6 = vsel %vm1364_vm1, %v1200_v12, 0.0 }
 0x2e2   : > { %v1095_v51 = vadd.f32 %v1094_v33, %v1093_v43  ;;  %v1240_v26 = vrot.slane %v1239_v31, 4  ;;  %v1356_v16 = vadd.f32 %v1355_v15, %v1354_v28 }
 0x2e3   : > { %v1302_v19 = vpop.xlane.xlu1 %1301 }
 0x2e4   : > { %v1096_v1 = vrot.slane %v1095_v51, 2  ;;  %v1241_v24 = vadd.f32 %v1240_v26, %v1239_v31  ;;  %v1357_v25 = vrot.slane %v1356_v16, 2  ;;  %v1309_v52 = vadd.f32 %v1308_v35, %v1302_v19 }
 0x2e6   : > { %v1097_v13 = vadd.f32 %v1096_v1, %v1095_v51  ;;  %v1242_v36 = vrot.slane %v1241_v24, 2  ;;  %v1310_v57 = vrot.slane %v1309_v52, 4  ;;  %v1358_v59 = vadd.f32 %v1357_v25, %v1356_v16 }
 0x2e8   : > { %v1098_v58 = vrot.slane %v1097_v13, 1  ;;  %v1243_v22 = vadd.f32 %v1242_v36, %v1241_v24  ;;  %v1311_v60 = vadd.f32 %v1310_v57, %v1309_v52  ;;  %v1359_v7 = vrot.slane %v1358_v59, 1 }
 0x2ea   : > { %v1099_v0 = vadd.f32 %v1098_v58, %v1097_v13  ;;  %v1244_v47 = vrot.slane %v1243_v22, 1  ;;  %v1312_v55 = vrot.slane %v1311_v60, 2  ;;  %v1360_v20 = vadd.f32 %v1359_v7, %v1358_v59 }
 0x2ec   : > { %v1363_v29 = vsel %vm1362_vm7, %v1099_v0, 0.0  ;;  %v1245_v32 = vadd.f32 %v1244_v47, %v1243_v22  ;;  %v1313_v9 = vadd.f32 %v1312_v55, %v1311_v60  ;;  %v1374_v37 = vsel %vm1373_vm10, %v1360_v20, 0.0 }
 0x2ed   : > { %v1366_v2 = vadd.f32 %v1365_v6, %v1363_v29 }
 0x2ee   : > { %v1368_v62 = vsel %vm1367_vm8, %v1245_v32, 0.0  ;;  %v1314_v3 = vrot.slane %v1313_v9, 1 }
 0x2ef   : > { %v1369_v5 = vadd.f32 %v1368_v62, %v1366_v2 }
 0x2f0   : > { %v1315_v18 = vadd.f32 %v1314_v3, %v1313_v9 }
 0x2f2   : > { %v1371_v49 = vsel %vm1370_vm9, %v1315_v18, 0.0 }
 0x2f3   : > { %v1372_v41 = vadd.f32 %v1371_v49, %v1369_v5 }
 0x2f5   : > { %v1375_v61 = vadd.f32 %v1374_v37, %v1372_v41 }
 0x2f7   : > { %v1376_v4 = vadd.f32 %v1375_v61, %v1361_v34 }
 0x2f9   : > { %1377 = vst [vmem:[#allocation2] sm:$0x1] %v1376_v4 }
 0x300   : > { %v1381_v38 = vld [vmem:[#allocation2] sm:$0x1] }
 0x301   : > { %1382 = vst [vmem:[%s521_s18] sm:$0x1] %v1381_v38 }
 0x302   : > { %1881 = shalt.err (!%p1878_p5)
}
 0x303   : > { %s1882_s23 = scalar_lea.hbm %s2532_s20, 16  ;;  %s1886_s15 = scalar_lea.hbm %s2588_s9, 32 }
 0x304   : > { %p1883_p6 = scmp.ne.s32.totalorder %s2532_s20, %s1882_s23  ;;  %p1887_p10 = scmp.lt.u32.totalorder %s2532_s20, %s2588_s9 }
 0x305   : > { %p1888_p11 = scmp.lt.u32.totalorder %s1886_s15, %s1882_s23  ;;  %p1890_p13 = scmp.lt.u32.totalorder %s1882_s23, %s2532_s20 }
 0x306   : > { %p1884_p7 = pnand %p1883_p6, %p2040_p4 }
 0x307   : > { %p1889_p12 = por %p1888_p11, %p1887_p10 }
 0x308   : > { %p1885_p9 = pneg %p1884_p7 }
 0x309   : > { %p1891_p0 = por %p1890_p13, %p1889_p12 }
 0x30b   : > { %p1892_p1 = pnand %p1891_p0, %p1885_p9 }
 0x30d   : > { %1895 = shalt.err (!%p1892_p1)
}
 0x30e   : > { %1744 = dma.vmem_to_hbm [thread:$0]  (%p2040_p4), %s2534_s29, 16, %s2532_s20, %s1384_s25  }
 0x30f PF: > { %p1750_p2 = scmp.ge.s32.totalorder %s1946_s14, 2  ;;  %s1408_s24 = sand.u32 1, %s1926_s30  }
 0x310   : > { %s1409_s26 = scalar_lea.sflag [#allocation4], %s1408_s24 }
 0x311   : > { %p1747_p3 = pnand %p1750_p2, %p2047_p8 }
 0x313   : > { %1921 = dma.done.wait (!%p1747_p3), %s1409_s26, 16  }
 0x314   : > { %1923 = vsyncadd (!%p1747_p3), %s1409_s26, 4294967280  ;;  %s22_s14 = sadd.s32 1, %s1946_s14   ;;  %s2591_s30 = smov %s1930_s10 }
 0x315   : > { %p19_p5 = scmp.ge.s32.totalorder %s22_s14, 4   ;;  %s2592_s10 = smov %s1934_s11 }
 0x316   : > { %s2593_s11 = smov %s2053_s22  ;;  %s2594_s12 = smov %s1942_s13 }
 0x317   : > { %s2595_s13 = smov %s2597_s17  ;;  %21 = sbr.rel (!%p19_p5) target bundleno = 4 (0x4), region = 123 }
 0x31e   :  { %1413 = vsyncpa [#allocation4], 1 }
 0x31f   :  { %1415 = vsyncpa [#allocation4 + $0x1], 1 }

</bundles_post_ra>
